<compile_context>
chip_gen: v7x
topology: tpu7x:2x2x1
jax: 0.10.0
libtpu: 0.0.40
codegen_flags: <defaults>
</compile_context>

<pallas_src>
import functools

import numpy as np
import jax
import jax.numpy as jnp
from jax import lax
from jax.experimental import pallas as pl
from jax.experimental.pallas import tpu as pltpu


_NEG = -1e9     # pad value for logits / mask-logits: softmax->~0, sigmoid->0, softplus->0


def _round_up(n, m):
    return ((n + m - 1) // m) * m


# ----------------------------------------------------------------------------
# Pallas kernel: per-batch cost matrix (class + mask-CE + dice + masked depth)
# ----------------------------------------------------------------------------
def _matcher_cost_kernel(logits_ref, onehot_ref, omask_ref, tmask_ref,
                         odepth_ref, tdepth_ref, dmask_ref,
                         c_ref, dacc_ref, msum_ref, *,
                         n_slabs, hw_slab, inv_num_points,
                         w_class, w_mask, w_dice, w_depth):
    """grid = (batch, hw_chunk).  The masked-L1 depth term accumulates across
    HW chunks; everything else runs once, at the last chunk, on lane-dense
    padded MXU tiles."""
    h = pl.program_id(1)
    f32 = jnp.float32
    Qp, Tp8 = dacc_ref.shape              # Tp8 = round_up(T, 8): real targets only
    Tp = c_ref.shape[-1]                  # lane-dense output width (mult of 128)
    dn = (((1,), (1,)), ((), ()))         # contract last dims: A @ B.T

    # ---- init accumulators at the first HW chunk of each batch element
    @pl.when(h == 0)
    def _init():
        dacc_ref[...] = jnp.zeros_like(dacc_ref)
        msum_ref[...] = jnp.zeros_like(msum_ref)

    # ---- masked-L1 depth numerator + per-target mask counts for this HW chunk.
    # Loop over lane slabs so the live (Qp, Tp8, hw_slab) broadcast stays small;
    # a single full-width scratch RMW per chunk (no per-block masked-store chain).
    acc = jnp.zeros((Qp, Tp8), f32)
    cnt = jnp.zeros((8, Tp8), f32)                          # lane-major counts
    ones_blk = jnp.ones((8, hw_slab), dtype=dmask_ref.dtype)
    for s in range(n_slabs):                                # static, small trip count
        sl = pl.ds(s * hw_slab, hw_slab)
        od = odepth_ref[0, :, sl].astype(f32)               # (Qp,  hw_slab)
        td = tdepth_ref[0, :, sl].astype(f32)               # (Tp8, hw_slab)
        dm_raw = dmask_ref[0, :, sl]                        # (Tp8, hw_slab) bf16/f32
        dm = dm_raw.astype(f32)
        diff = jnp.abs(od[:, None, :] - td[None, :, :]) * dm[None, :, :]
        acc = acc + jnp.sum(diff, axis=-1)                  # (Qp, Tp8)
        # lane-major per-target count via a tiny MXU dot (exact: 0/1 * f32 acc)
        cnt = cnt + lax.dot_general(ones_blk, dm_raw, dn, preferred_element_type=f32)
    dacc_ref[...] = dacc_ref[...] + acc                     # one wide RMW per chunk
    msum_ref[...] = msum_ref[...] + cnt

    # ---- remaining costs + combine, once per batch element
    @pl.when(h == pl.num_programs(1) - 1)
    def _finalize():
        mm_dt = onehot_ref.dtype                            # bf16 (MXU) or f32

        # classification cost: -softmax(logits)[:, tgt_ids] via one-hot matmul
        prob = jax.nn.softmax(logits_ref[0].astype(f32), axis=-1)
        cost_class = -lax.dot_general(prob.astype(mm_dt), onehot_ref[0], dn,
                                      preferred_element_type=f32)

        # point-sampled mask costs
        x = omask_ref[0].astype(f32)                        # (Qp, Pp) logits
        t = tmask_ref[0]                                    # (Tp, Pp)
        sig = jax.nn.sigmoid(x)
        xt = lax.dot_general(x.astype(mm_dt), t, dn, preferred_element_type=f32)
        st = lax.dot_general(sig.astype(mm_dt), t, dn, preferred_element_type=f32)

        # batch_sigmoid_ce_loss (exact algebraic simplification):
        #   softplus(-x)@t.T + softplus(x)@(1-t).T == rowsum(softplus(x)) - x@t.T
        sp_sum = jnp.sum(jax.nn.softplus(x), axis=-1, keepdims=True)
        cost_mask = (sp_sum - xt) * inv_num_points

        # batch_dice_loss; t.sum via ones-dot -> lane-major (no relayout)
        t_sum = lax.dot_general(jnp.ones((8, t.shape[-1]), mm_dt), t, dn,
                                preferred_element_type=f32)[0:1, :]   # (1, Tp)
        dice_den = jnp.sum(sig, axis=-1, keepdims=True) + t_sum + 1.0
        cost_dice = 1.0 - (2.0 * st + 1.0) * pl.reciprocal(dice_den, approx=True)

        # masked-L1 depth cost from the streamed accumulators
        inv_cnt = pl.reciprocal(jnp.maximum(msum_ref[0:1, :], 1e-6), approx=True)
        cost_depth = (dacc_ref[...] + 1.0) * inv_cnt        # (Qp, Tp8)

        base = w_mask * cost_mask + w_class * cost_class + w_dice * cost_dice
        if Tp8 < Tp:
            # lane-dense full-width store first, then add the depth term on the
            # first Tp8 lanes (one small masked VMEM store per batch element).
            c_ref[0] = base.astype(c_ref.dtype)
            c_ref[0, :, :Tp8] = (base[:, :Tp8]
                                 + w_depth * cost_depth).astype(c_ref.dtype)
        else:
            c_ref[0] = (base + w_depth * cost_depth).astype(c_ref.dtype)


def matcher_cost_pallas(logits, onehot, omask, tmask, odepth, tdepth, dmask, *,
                        cost_class=1.0, cost_mask=1.0, cost_dice=1.0,
                        cost_depth=1.0, hw_tile=1024, mxu_bf16=True,
                        depth_bf16=True, batch_core_parallel=False):
    """Returns the [B, Q, T] matching cost matrix (without the plane-param term)."""
    B, Q, K = logits.shape
    T = onehot.shape[1]
    P = omask.shape[-1]
    HW = odepth.shape[-1]
    f32 = jnp.float32
    mm_dt = jnp.bfloat16 if mxu_bf16 else f32
    dep_dt = jnp.bfloat16 if depth_bf16 else f32

    # lane dims (K, P, output-T) to 128, sublane dims (Q, streamed-T) to 8
    Qp = _round_up(Q, 8)
    Tp = _round_up(T, 128)     # lane-dense output / MXU result width
    Tp8 = _round_up(T, 8)      # sublane width of the streamed depth blocks
    Kp = _round_up(K, 128)
    Pp = _round_up(P, 128)

    # HW slab bounds the live (Qp, Tp8, hw_slab) f32 intermediate to ~2 MiB so
    # the streaming loop stays VALU-bound instead of spilling at production Q/T.
    budget_elems = (2 << 20) // 4
    hw_slab = max(128, min(2048, (budget_elems // max(Qp * Tp8, 1)) // 128 * 128))
    hw_slab = min(hw_slab, _round_up(HW, 128))
    hw_t = min(_round_up(hw_tile, hw_slab), _round_up(HW, hw_slab))
    HWp = _round_up(HW, hw_t)
    n_hw = HWp // hw_t
    n_slabs = hw_t // hw_slab

    def pad(a, rows, cols, value=0.0, dtype=f32):
        a = a.astype(f32)
        a = jnp.pad(a, ((0, 0), (0, rows - a.shape[1]), (0, cols - a.shape[2])),
                    constant_values=value)
        return a.astype(dtype)

    logits_p = pad(logits, Qp, Kp, _NEG)             # padded classes get prob ~ 0
    onehot_p = pad(onehot, Tp, Kp, 0.0, mm_dt)       # 0/1 -> exact in bf16
    omask_p = pad(omask, Qp, Pp, _NEG)               # padded points: sigmoid/softplus -> 0
    tmask_p = pad(tmask, Tp, Pp, 0.0, mm_dt)
    odepth_p = pad(odepth, Qp, HWp, 0.0, dep_dt)     # depth streams: bf16 in HBM
    tdepth_p = pad(tdepth, Tp8, HWp, 0.0, dep_dt)    # T padded to 8 only (sublane)
    dmask_p = pad(dmask, Tp8, HWp, 0.0, dep_dt)      # zero mask => padding contributes 0

    kernel = functools.partial(
        _matcher_cost_kernel,
        n_slabs=n_slabs, hw_slab=hw_slab, inv_num_points=1.0 / float(P),
        w_class=float(cost_class), w_mask=float(cost_mask),
        w_dice=float(cost_dice), w_depth=float(cost_depth))

    batch_spec = lambda r, c: pl.BlockSpec((1, r, c), lambda b, h: (b, 0, 0))
    chunk_spec = lambda r: pl.BlockSpec((1, r, hw_t), lambda b, h: (b, 0, h))

    # VMEM: actual need (double-buffered blocks + scratch + live intermediate)
    # + 8 MiB margin, capped at 48 MiB (v7x physical VMEM is 64 MiB per TC).
    mm_isz = jnp.dtype(mm_dt).itemsize
    dep_isz = jnp.dtype(dep_dt).itemsize
    blk_bytes = (4 * Qp * Kp + mm_isz * Tp * Kp + 4 * Qp * Pp + mm_isz * Tp * Pp
                 + dep_isz * (Qp + 2 * Tp8) * hw_t + 4 * Qp * Tp)
    scratch_bytes = 4 * (Qp + 8) * max(Tp8, 128)
    interm_bytes = 4 * Qp * Tp8 * hw_slab
    vmem_limit = int(min(2 * blk_bytes + scratch_bytes + interm_bytes + (8 << 20),
                         48 << 20))

    cost = pl.CostEstimate(
        flops=int(B * (2 * Qp * Tp * Kp + 4 * Qp * Tp * Pp
                       + 3 * Qp * Tp8 * HWp + 16 * Tp8 * HWp)),
        transcendentals=int(B * (Qp * Kp + 2 * Qp * Pp)),
        bytes_accessed=int(sum(int(a.size) * a.dtype.itemsize for a in
                               (logits_p, onehot_p, omask_p, tmask_p,
                                odepth_p, tdepth_p, dmask_p)) + B * Qp * Tp * 4))

    if batch_core_parallel:
        # v7x: shard the batch axis across the 2 TensorCores.
        dims = (pltpu.CORE_PARALLEL, pltpu.ARBITRARY)
    else:
        dims = ("parallel", "arbitrary")

    c_pad = pl.pallas_call(
        kernel,
        out_shape=jax.ShapeDtypeStruct((B, Qp, Tp), f32),
        grid=(B, n_hw),
        in_specs=[
            batch_spec(Qp, Kp),       # logits
            batch_spec(Tp, Kp),       # target one-hot labels
            batch_spec(Qp, Pp),       # point-sampled predicted mask logits
            batch_spec(Tp, Pp),       # point-sampled target masks
            chunk_spec(Qp),           # predicted depth (flattened, HW-chunked)
            chunk_spec(Tp8),          # target plane depth (T padded to 8 only)
            chunk_spec(Tp8),          # depth mask (T padded to 8 only)
        ],
        out_specs=pl.BlockSpec((1, Qp, Tp), lambda b, h: (b, 0, 0)),
        scratch_shapes=[pltpu.VMEM((Qp, Tp8), f32),    # depth-numerator accumulator
                        pltpu.VMEM((8, Tp8), f32)],    # lane-major mask-count accum
        compiler_params=pltpu.CompilerParams(
            dimension_semantics=dims, vmem_limit_bytes=vmem_limit),
        cost_estimate=cost,
    )(logits_p, onehot_p, omask_p, tmask_p, odepth_p, tdepth_p, dmask_p)

    # drop padded rows/cols (padded targets carry finite garbage) before assignment
    return c_pad[:, :Q, :T]


# ----------------------------------------------------------------------------
# Plain-JAX glue: point_sample (torch grid_sample, align_corners=False, zeros pad)
# coords in [0,1] map to pixel centers via x_pix = x*W - 0.5
# ----------------------------------------------------------------------------
def point_sample(masks, coords):
    """masks: [N, H, W] float; coords: [P, 2] in [0, 1] ordered (x, y) -> [N, P]."""
    N, H, W = masks.shape
    x = coords[:, 0] * W - 0.5
    y = coords[:, 1] * H - 0.5
    x0 = jnp.floor(x)
    y0 = jnp.floor(y)
    x1 = x0 + 1.0
    y1 = y0 + 1.0
    wx1 = x - x0
    wx0 = 1.0 - wx1
    wy1 = y - y0
    wy0 = 1.0 - wy1

    def gather(yy, xx):
        valid = ((xx >= 0) & (xx < W) & (yy >= 0) & (yy < H)).astype(masks.dtype)
        xi = jnp.clip(xx, 0, W - 1).astype(jnp.int32)
        yi = jnp.clip(yy, 0, H - 1).astype(jnp.int32)
        return masks[:, yi, xi] * valid[None, :]

    return (gather(y0, x0) * (wy0 * wx0)[None, :]
            + gather(y0, x1) * (wy0 * wx1)[None, :]
            + gather(y1, x0) * (wy1 * wx0)[None, :]
            + gather(y1, x1) * (wy1 * wx1)[None, :])


# ----------------------------------------------------------------------------
# Pure-JAX reference (same math, same quantized operands) for debug validation
# ----------------------------------------------------------------------------
def _reference_cost(logits, onehot, x, t, op, tpar, od, td, dm, *, weights, mm_dtype):
    f32 = jnp.float32
    prob = jax.nn.softmax(logits, axis=-1)
    cost_class = -jnp.einsum("bqk,btk->bqt", prob.astype(mm_dtype),
                             onehot.astype(mm_dtype), preferred_element_type=f32)
    sig = jax.nn.sigmoid(x)
    st = jnp.einsum("bqp,btp->bqt", sig.astype(mm_dtype), t.astype(mm_dtype),
                    preferred_element_type=f32)
    xt = jnp.einsum("bqp,btp->bqt", x.astype(mm_dtype), t.astype(mm_dtype),
                    preferred_element_type=f32)
    # == softplus(-x)@t.T + softplus(x)@(1-t).T
    cost_mask = (jnp.sum(jax.nn.softplus(x), -1)[:, :, None] - xt) / x.shape[-1]
    dice_den = sig.sum(-1)[:, :, None] + t.sum(-1)[:, None, :] + 1.0
    cost_dice = 1.0 - (2.0 * st + 1.0) / dice_den
    cost_param = jnp.sum(jnp.abs(op[:, :, None, :] - tpar[:, None, :, :]), axis=-1)
    diff = jnp.abs(od[:, :, None, :] - td[:, None, :, :]) * dm[:, None, :, :]
    cost_depth = (diff.sum(-1) + 1.0) / jnp.maximum(dm.sum(-1), 1e-6)[:, None, :]
    return (weights["mask"] * cost_mask + weights["class"] * cost_class
            + weights["dice"] * cost_dice + weights["param"] * cost_param
            + weights["depth"] * cost_depth)


# ----------------------------------------------------------------------------
# Assignment (host side) -- Hungarian if scipy present, else greedy fallback
# ----------------------------------------------------------------------------
try:
    from scipy.optimize import linear_sum_assignment as _lsa
except Exception:  # pragma: no cover
    _lsa = None  # TODO(synk): Hungarian (linear_sum_assignment) has no Pallas equivalent; greedy fallback.


def _greedy_assignment(C):
    C = np.array(C, copy=True, dtype=np.float64)
    n = min(C.shape)
    rows, cols = [], []
    for _ in range(n):
        r, c = np.unravel_index(np.argmin(C), C.shape)
        rows.append(r)
        cols.append(c)
        C[r, :] = np.inf
        C[:, c] = np.inf
    order = np.argsort(rows)
    return np.asarray(rows)[order], np.asarray(cols)[order]


def assign(C):
    if _lsa is not None:
        return _lsa(np.asarray(C))
    return _greedy_assignment(C)


# ----------------------------------------------------------------------------
# HungarianMatcher wrapper (forward pass)
# ----------------------------------------------------------------------------
class HungarianMatcherPallas:
    """predict_param / predict_depth enabled, normalize_param disabled.
    # TODO(synk): predict_pixel_normal, normalize_param and the resize14 depth
    #             fallback branches are not implemented.
    """

    def __init__(self, cost_class=1.0, cost_mask=1.0, cost_dice=1.0,
                 cost_param=1.0, cost_depth=1.0, num_points=128,
                 mxu_bf16=True, depth_bf16=True, batch_core_parallel=False,
                 debug_validate=False):
        self.cost_class = cost_class
        self.cost_mask = cost_mask
        self.cost_dice = cost_dice
        self.cost_param = cost_param
        self.cost_depth = cost_depth
        self.num_points = num_points
        self.mxu_bf16 = mxu_bf16
        self.depth_bf16 = depth_bf16
        self.batch_core_parallel = batch_core_parallel
        self.debug_validate = debug_validate

    def __call__(self, outputs, targets, rng):
        pred_logits = outputs["pred_logits"].astype(jnp.float32)   # [B, Q, K]
        pred_masks = outputs["pred_masks"].astype(jnp.float32)     # [B, Q, Hm, Wm]
        pred_params = outputs["pred_params"].astype(jnp.float32)   # [B, Q, 3]
        pred_depths = outputs["pred_depths"].astype(jnp.float32)   # [B, Q, Hd, Wd]
        B, Q, K = pred_logits.shape

        # Batched target stacking (assumes a common number of targets per image,
        # as in the demo; ragged counts would be padded here in general).
        labels = jnp.stack([t["labels"] for t in targets])                           # [B, T]
        tgt_masks = jnp.stack([t["masks"] for t in targets]).astype(jnp.float32)     # [B, T, Hm, Wm]
        tgt_params = jnp.stack([t["params"] for t in targets]).astype(jnp.float32)   # [B, T, 3]
        tgt_depths = jnp.stack([t["plane_depths"] for t in targets]).astype(jnp.float32)
        T = labels.shape[1]

        # Per-image random point coords (same points for all queries/targets of
        # one image, fresh per image -- matches torch.rand(1, P, 2) in the loop).
        coords = jax.random.uniform(rng, (B, self.num_points, 2), dtype=jnp.float32)
        omask = jax.vmap(point_sample)(pred_masks, coords)          # [B, Q, P]
        tmask = jax.vmap(point_sample)(tgt_masks, coords)           # [B, T, P]
        onehot = jax.nn.one_hot(labels, K, dtype=jnp.float32)       # [B, T, K]
        odepth = pred_depths.reshape(B, Q, -1)                      # [B, Q, HW]
        tdepth = tgt_depths.reshape(B, T, -1)                       # [B, T, HW]
        dmask = tgt_masks.reshape(B, T, -1)                         # [B, T, HW]

        C = matcher_cost_pallas(
            pred_logits, onehot, omask, tmask, odepth, tdepth, dmask,
            cost_class=self.cost_class, cost_mask=self.cost_mask,
            cost_dice=self.cost_dice, cost_depth=self.cost_depth,
            mxu_bf16=self.mxu_bf16, depth_bf16=self.depth_bf16,
            batch_core_parallel=self.batch_core_parallel)

        # plane-parameter L1 (cdist p=1): O(Q*T*3) trivial work -> plain JAX.
        cost_param = jnp.sum(jnp.abs(pred_params[:, :, None, :]
                                     - tgt_params[:, None, :, :]), axis=-1)
        C = C + self.cost_param * cost_param

        if self.debug_validate:  # off the hot path by default
            mm = jnp.bfloat16 if self.mxu_bf16 else jnp.float32
            ddt = jnp.bfloat16 if self.depth_bf16 else jnp.float32
            q = lambda a, dt: a.astype(dt).astype(jnp.float32)
            w = {"class": self.cost_class, "mask": self.cost_mask,
                 "dice": self.cost_dice, "param": self.cost_param,
                 "depth": self.cost_depth}
            C_ref = _reference_cost(
                pred_logits, onehot, omask, q(tmask, mm), pred_params, tgt_params,
                q(odepth, ddt), q(tdepth, ddt), q(dmask, ddt),
                weights=w, mm_dtype=mm)
            np.testing.assert_allclose(np.asarray(C), np.asarray(C_ref),
                                       rtol=5e-2, atol=5e-2)

        C_host = np.asarray(C)   # single host transfer (like .cpu() in the original)
        indices = [assign(C_host[b]) for b in range(B)]
        return [(np.asarray(i, dtype=np.int64), np.asarray(j, dtype=np.int64))
                for i, j in indices], C


# ----------------------------------------------------------------------------
# Main
# ----------------------------------------------------------------------------
if __name__ == "__main__":
    key = jax.random.PRNGKey(0)
    B, Q, K, T = 2, 8, 8, 8          # batch, queries, classes, targets
    Hm = Wm = 16                     # mask resolution
    Hd = Wd = 16                     # depth resolution
    P = 128                          # num sampled points

    ks = jax.random.split(key, 8)
    outputs = {
        "pred_logits": jax.random.normal(ks[0], (B, Q, K), dtype=jnp.float32),
        "pred_masks": jax.random.normal(ks[1], (B, Q, Hm, Wm), dtype=jnp.float32),
        "pred_params": jax.random.normal(ks[2], (B, Q, 3), dtype=jnp.float32),
        "pred_depths": jax.random.uniform(ks[3], (B, Q, Hd, Wd),
                                          dtype=jnp.float32, minval=0.5, maxval=5.0),
    }
    targets = []
    for b in range(B):
        kb = jax.random.split(ks[4 + b], 4)
        targets.append({
            "labels": jax.random.randint(kb[0], (T,), 0, K - 1),
            "masks": (jax.random.uniform(kb[1], (T, Hm, Wm)) > 0.5).astype(jnp.float32),
            "params": jax.random.normal(kb[2], (T, 3), dtype=jnp.float32),
            "plane_depths": jax.random.uniform(kb[3], (T, Hd, Wd),
                                               dtype=jnp.float32, minval=0.5, maxval=5.0),
        })

    matcher = HungarianMatcherPallas(cost_class=2.0, cost_mask=5.0, cost_dice=5.0,
                                     cost_param=1.0, cost_depth=1.0, num_points=P,
                                     mxu_bf16=True, depth_bf16=True,
                                     batch_core_parallel=False,
                                     debug_validate=True)  # one-off check; keep False in prod
    indices, C = matcher(outputs, targets, jax.random.PRNGKey(42))
    C = jax.block_until_ready(C)

    assert C.shape == (B, Q, T)
    assert bool(jnp.all(jnp.isfinite(C)))
    for i, j in indices:
        assert len(i) == len(j) == min(Q, T)
    print("KERNEL_OK")
</pallas_src>

<mosaic_0001>
module attributes {stable_mosaic.version = 11 : i64} {
  func.func @_matcher_cost_kernel(%arg0: i32, %arg1: i32, %arg2: memref<1x8x128xf32, #tpu.memory_space<vmem>>, %arg3: memref<1x128x128xbf16, #tpu.memory_space<vmem>>, %arg4: memref<1x8x128xf32, #tpu.memory_space<vmem>>, %arg5: memref<1x128x128xbf16, #tpu.memory_space<vmem>>, %arg6: memref<1x8x256xbf16, #tpu.memory_space<vmem>>, %arg7: memref<1x8x256xbf16, #tpu.memory_space<vmem>>, %arg8: memref<1x8x256xbf16, #tpu.memory_space<vmem>>, %arg9: memref<1x8x128xf32, #tpu.memory_space<vmem>>, %arg10: memref<8x8xf32, #tpu.memory_space<vmem>>, %arg11: memref<8x8xf32, #tpu.memory_space<vmem>>) attributes {dimension_semantics = [#tpu.dimension_semantics<parallel>, #tpu.dimension_semantics<arbitrary>], iteration_bounds = array<i64: 2, 1>, scalar_prefetch = 0 : i64, scratch_operands = 2 : i64, tpu.core_type = #tpu.core_type<tc>, window_params = [{transform_indices = @transform_0, window_bounds = array<i64: 1, 8, 128>}, {transform_indices = @transform_1, window_bounds = array<i64: 1, 128, 128>}, {transform_indices = @transform_2, window_bounds = array<i64: 1, 8, 128>}, {transform_indices = @transform_3, window_bounds = array<i64: 1, 128, 128>}, {transform_indices = @transform_4, window_bounds = array<i64: 1, 8, 256>}, {transform_indices = @transform_5, window_bounds = array<i64: 1, 8, 256>}, {transform_indices = @transform_6, window_bounds = array<i64: 1, 8, 256>}, {transform_indices = @transform_7, window_bounds = array<i64: 1, 8, 128>}]} {
    %c0_i32 = arith.constant 0 : i32
    %0 = arith.cmpi eq, %arg1, %c0_i32 : i32
    %1 = arith.extui %0 : i1 to i32
    %c0_i32_0 = arith.constant 0 : i32
    %2 = arith.cmpi ne, %1, %c0_i32_0 : i32
    scf.if %2 {
      %cst_23 = arith.constant 0.000000e+00 : f32
      %37 = vector.broadcast %cst_23 : f32 to vector<8x8xf32>
      %c0_24 = arith.constant 0 : index
      %c0_25 = arith.constant 0 : index
      %38 = vector.load %arg10[%c0_24, %c0_25] : memref<8x8xf32, #tpu.memory_space<vmem>>, vector<8x8xf32>
      tpu.vector_store %arg10[%c0_24, %c0_25], %37 {strides = array<i32>} : memref<8x8xf32, #tpu.memory_space<vmem>>, vector<8x8xf32>,
      %cst_26 = arith.constant 0.000000e+00 : f32
      %39 = vector.broadcast %cst_26 : f32 to vector<8x8xf32>
      %c0_27 = arith.constant 0 : index
      %c0_28 = arith.constant 0 : index
      %40 = vector.load %arg11[%c0_27, %c0_28] : memref<8x8xf32, #tpu.memory_space<vmem>>, vector<8x8xf32>
      tpu.vector_store %arg11[%c0_27, %c0_28], %39 {strides = array<i32>} : memref<8x8xf32, #tpu.memory_space<vmem>>, vector<8x8xf32>,
    } else {
    }
    %cst = arith.constant 0.000000e+00 : f32
    %3 = vector.broadcast %cst : f32 to vector<8x8xf32>
    %cst_1 = arith.constant 0.000000e+00 : f32
    %4 = vector.broadcast %cst_1 : f32 to vector<8x8xf32>
    %cst_2 = arith.constant 1.000000e+00 : bf16
    %5 = vector.broadcast %cst_2 : bf16 to vector<8x256xbf16>
    %c0 = arith.constant 0 : index
    %c0_3 = arith.constant 0 : index
    %c0_4 = arith.constant 0 : index
    %6 = vector.load %arg6[%c0, %c0_3, %c0_4] : memref<1x8x256xbf16, #tpu.memory_space<vmem>>, vector<1x8x256xbf16>
    %7 = vector.shape_cast %6 : vector<1x8x256xbf16> to vector<8x256xbf16>
    %8 = arith.extf %7 : vector<8x256xbf16> to vector<8x256xf32>
    %c0_5 = arith.constant 0 : index
    %c0_6 = arith.constant 0 : index
    %c0_7 = arith.constant 0 : index
    %9 = vector.load %arg7[%c0_5, %c0_6, %c0_7] : memref<1x8x256xbf16, #tpu.memory_space<vmem>>, vector<1x8x256xbf16>
    %10 = vector.shape_cast %9 : vector<1x8x256xbf16> to vector<8x256xbf16>
    %11 = arith.extf %10 : vector<8x256xbf16> to vector<8x256xf32>
    %c0_8 = arith.constant 0 : index
    %c0_9 = arith.constant 0 : index
    %c0_10 = arith.constant 0 : index
    %12 = vector.load %arg8[%c0_8, %c0_9, %c0_10] : memref<1x8x256xbf16, #tpu.memory_space<vmem>>, vector<1x8x256xbf16>
    %13 = vector.shape_cast %12 : vector<1x8x256xbf16> to vector<8x256xbf16>
    %14 = arith.extf %13 : vector<8x256xbf16> to vector<8x256xf32>
    %15 = vector.shape_cast %8 : vector<8x256xf32> to vector<8x1x256xf32>
    %16 = vector.shape_cast %11 : vector<8x256xf32> to vector<1x8x256xf32>
    %17 = vector.broadcast %15 : vector<8x1x256xf32> to vector<8x8x256xf32>
    %18 = vector.broadcast %16 : vector<1x8x256xf32> to vector<8x8x256xf32>
    %19 = arith.subf %17, %18 : vector<8x8x256xf32>
    %20 = math.absf %19 : vector<8x8x256xf32>
    %21 = vector.shape_cast %14 : vector<8x256xf32> to vector<1x8x256xf32>
    %22 = vector.broadcast %21 : vector<1x8x256xf32> to vector<8x8x256xf32>
    %23 = arith.mulf %20, %22 : vector<8x8x256xf32>
    %cst_11 = arith.constant dense<0.000000e+00> : vector<8x8xf32>
    %24 = vector.multi_reduction <add>, %23, %cst_11 [2] : vector<8x8x256xf32> to vector<8x8xf32>
    %25 = arith.addf %3, %24 : vector<8x8xf32>
    %cst_12 = arith.constant dense<0.000000e+00> : vector<8x8xf32>
    %26 = tpu.matmul %5, %13, %cst_12 {dimension_numbers = #tpu.dot_dimension_numbers<[1], [1], [0], [0], [0, 0, 1, 0], [], []>} : vector<8x256xbf16>, vector<8x256xbf16>, vector<8x8xf32> -> vector<8x8xf32>
    %27 = arith.addf %4, %26 : vector<8x8xf32>
    %c0_13 = arith.constant 0 : index
    %c0_14 = arith.constant 0 : index
    %28 = vector.load %arg10[%c0_13, %c0_14] : memref<8x8xf32, #tpu.memory_space<vmem>>, vector<8x8xf32>
    %29 = arith.addf %28, %25 : vector<8x8xf32>
    %c0_15 = arith.constant 0 : index
    %c0_16 = arith.constant 0 : index
    %30 = vector.load %arg10[%c0_15, %c0_16] : memref<8x8xf32, #tpu.memory_space<vmem>>, vector<8x8xf32>
    tpu.vector_store %arg10[%c0_15, %c0_16], %29 {strides = array<i32>} : memref<8x8xf32, #tpu.memory_space<vmem>>, vector<8x8xf32>,
    %c0_17 = arith.constant 0 : index
    %c0_18 = arith.constant 0 : index
    %31 = vector.load %arg11[%c0_17, %c0_18] : memref<8x8xf32, #tpu.memory_space<vmem>>, vector<8x8xf32>
    %32 = arith.addf %31, %27 : vector<8x8xf32>
    %c0_19 = arith.constant 0 : index
    %c0_20 = arith.constant 0 : index
    %33 = vector.load %arg11[%c0_19, %c0_20] : memref<8x8xf32, #tpu.memory_space<vmem>>, vector<8x8xf32>
    tpu.vector_store %arg11[%c0_19, %c0_20], %32 {strides = array<i32>} : memref<8x8xf32, #tpu.memory_space<vmem>>, vector<8x8xf32>,
    %c0_i32_21 = arith.constant 0 : i32
    %34 = arith.cmpi eq, %arg1, %c0_i32_21 : i32
    %35 = arith.extui %34 : i1 to i32
    %c0_i32_22 = arith.constant 0 : i32
    %36 = arith.cmpi ne, %35, %c0_i32_22 : i32
    scf.if %36 {
      %c0_23 = arith.constant 0 : index
      %c0_24 = arith.constant 0 : index
      %c0_25 = arith.constant 0 : index
      %37 = vector.load %arg2[%c0_23, %c0_24, %c0_25] : memref<1x8x128xf32, #tpu.memory_space<vmem>>, vector<1x8x128xf32>
      %38 = vector.shape_cast %37 : vector<1x8x128xf32> to vector<8x128xf32>
      %cst_26 = arith.constant dense<0xFF800000> : vector<8xf32>
      %39 = vector.multi_reduction <maximumf>, %38, %cst_26 [1] : vector<8x128xf32> to vector<8xf32>
      %cst_27 = arith.constant 0xFF800000 : f32
      %40 = vector.broadcast %cst_27 : f32 to vector<8xf32>
      %41 = arith.maximumf %40, %39 : vector<8xf32>
      %42 = vector.shape_cast %41 : vector<8xf32> to vector<8x1xf32>
      %43 = vector.broadcast %42 : vector<8x1xf32> to vector<8x128xf32>
      %44 = arith.subf %38, %43 : vector<8x128xf32>
      %45 = math.exp %44 : vector<8x128xf32>
      %cst_28 = arith.constant dense<0.000000e+00> : vector<8xf32>
      %46 = vector.multi_reduction <add>, %45, %cst_28 [1] : vector<8x128xf32> to vector<8xf32>
      %47 = vector.shape_cast %46 : vector<8xf32> to vector<8x1xf32>
      %48 = vector.broadcast %47 : vector<8x1xf32> to vector<8x128xf32>
      %49 = arith.divf %45, %48 : vector<8x128xf32>
      %50 = arith.truncf %49 : vector<8x128xf32> to vector<8x128xbf16>
      %c0_29 = arith.constant 0 : index
      %c0_30 = arith.constant 0 : index
      %c0_31 = arith.constant 0 : index
      %51 = vector.load %arg3[%c0_29, %c0_30, %c0_31] : memref<1x128x128xbf16, #tpu.memory_space<vmem>>, vector<1x128x128xbf16>
      %52 = vector.shape_cast %51 : vector<1x128x128xbf16> to vector<128x128xbf16>
      %cst_32 = arith.constant dense<0.000000e+00> : vector<8x128xf32>
      %53 = tpu.matmul %50, %52, %cst_32 {dimension_numbers = #tpu.dot_dimension_numbers<[1], [1], [0], [0], [0, 0, 1, 0], [], []>} : vector<8x128xbf16>, vector<128x128xbf16>, vector<8x128xf32> -> vector<8x128xf32>
      %cst_33 = arith.constant 0.000000e+00 : f32
      %54 = vector.broadcast %cst_33 : f32 to vector<8x128xf32>
      %55 = arith.subf %54, %53 : vector<8x128xf32>
      %c0_34 = arith.constant 0 : index
      %c0_35 = arith.constant 0 : index
      %c0_36 = arith.constant 0 : index
      %56 = vector.load %arg4[%c0_34, %c0_35, %c0_36] : memref<1x8x128xf32, #tpu.memory_space<vmem>>, vector<1x8x128xf32>
      %57 = vector.shape_cast %56 : vector<1x8x128xf32> to vector<8x128xf32>
      %c0_37 = arith.constant 0 : index
      %c0_38 = arith.constant 0 : index
      %c0_39 = arith.constant 0 : index
      %58 = vector.load %arg5[%c0_37, %c0_38, %c0_39] : memref<1x128x128xbf16, #tpu.memory_space<vmem>>, vector<1x128x128xbf16>
      %59 = vector.shape_cast %58 : vector<1x128x128xbf16> to vector<128x128xbf16>
      %60 = arith.negf %57 : vector<8x128xf32>
      %61 = math.exp %60 : vector<8x128xf32>
      %cst_40 = arith.constant 1.000000e+00 : f32
      %62 = vector.broadcast %cst_40 : f32 to vector<8x128xf32>
      %63 = arith.addf %62, %61 : vector<8x128xf32>
      %64 = arith.divf %62, %63 : vector<8x128xf32>
      %65 = arith.truncf %57 : vector<8x128xf32> to vector<8x128xbf16>
      %cst_41 = arith.constant dense<0.000000e+00> : vector<8x128xf32>
      %66 = tpu.matmul %65, %59, %cst_41 {dimension_numbers = #tpu.dot_dimension_numbers<[1], [1], [0], [0], [0, 0, 1, 0], [], []>} : vector<8x128xbf16>, vector<128x128xbf16>, vector<8x128xf32> -> vector<8x128xf32>
      %67 = arith.truncf %64 : vector<8x128xf32> to vector<8x128xbf16>
      %cst_42 = arith.constant dense<0.000000e+00> : vector<8x128xf32>
      %68 = tpu.matmul %67, %59, %cst_42 {dimension_numbers = #tpu.dot_dimension_numbers<[1], [1], [0], [0], [0, 0, 1, 0], [], []>} : vector<8x128xbf16>, vector<128x128xbf16>, vector<8x128xf32> -> vector<8x128xf32>
      %cst_43 = arith.constant 0.000000e+00 : f32
      %69 = vector.broadcast %cst_43 : f32 to vector<8x128xf32>
      %70 = arith.maximumf %57, %69 : vector<8x128xf32>
      %71 = vector.broadcast %cst_43 : f32 to vector<8x128xf32>
      %72 = arith.subf %57, %71 : vector<8x128xf32>
      %73 = arith.cmpf one, %72, %72 : vector<8x128xf32>
      %74 = vector.broadcast %cst_43 : f32 to vector<8x128xf32>
      %75 = arith.addf %57, %74 : vector<8x128xf32>
      %76 = math.absf %72 : vector<8x128xf32>
      %cst_44 = arith.constant 0.000000e+00 : f32
      %77 = vector.broadcast %cst_44 : f32 to vector<8x128xf32>
      %78 = arith.subf %77, %76 : vector<8x128xf32>
      %79 = math.exp %78 : vector<8x128xf32>
      %80 = math.log1p %79 : vector<8x128xf32>
      %81 = arith.addf %70, %80 : vector<8x128xf32>
      %82 = arith.select %73, %75, %81 : vector<8x128xi1>, vector<8x128xf32>
      %cst_45 = arith.constant dense<0.000000e+00> : vector<8xf32>
      %83 = vector.multi_reduction <add>, %82, %cst_45 [1] : vector<8x128xf32> to vector<8xf32>
      %84 = vector.shape_cast %83 : vector<8xf32> to vector<8x1xf32>
      %85 = vector.broadcast %84 : vector<8x1xf32> to vector<8x128xf32>
      %86 = arith.subf %85, %66 : vector<8x128xf32>
      %cst_46 = arith.constant 7.812500e-03 : f32
      %87 = vector.broadcast %cst_46 : f32 to vector<8x128xf32>
      %88 = arith.mulf %86, %87 : vector<8x128xf32>
      %cst_47 = arith.constant 1.000000e+00 : bf16
      %89 = vector.broadcast %cst_47 : bf16 to vector<8x128xbf16>
      %cst_48 = arith.constant dense<0.000000e+00> : vector<8x128xf32>
      %90 = tpu.matmul %89, %59, %cst_48 {dimension_numbers = #tpu.dot_dimension_numbers<[1], [1], [0], [0], [0, 0, 1, 0], [], []>} : vector<8x128xbf16>, vector<128x128xbf16>, vector<8x128xf32> -> vector<8x128xf32>
      %91 = vector.extract_strided_slice %90 {offsets = [0, 0], sizes = [1, 128], strides = [1, 1]} : vector<8x128xf32> to vector<1x128xf32>
      %cst_49 = arith.constant dense<0.000000e+00> : vector<8xf32>
      %92 = vector.multi_reduction <add>, %64, %cst_49 [1] : vector<8x128xf32> to vector<8xf32>
      %93 = vector.shape_cast %92 : vector<8xf32> to vector<8x1xf32>
      %94 = vector.broadcast %93 : vector<8x1xf32> to vector<8x128xf32>
      %95 = vector.broadcast %91 : vector<1x128xf32> to vector<8x128xf32>
      %96 = arith.addf %94, %95 : vector<8x128xf32>
      %cst_50 = arith.constant 1.000000e+00 : f32
      %97 = vector.broadcast %cst_50 : f32 to vector<8x128xf32>
      %98 = arith.addf %96, %97 : vector<8x128xf32>
      %cst_51 = arith.constant 2.000000e+00 : f32
      %99 = vector.broadcast %cst_51 : f32 to vector<8x128xf32>
      %100 = arith.mulf %99, %68 : vector<8x128xf32>
      %cst_52 = arith.constant 1.000000e+00 : f32
      %101 = vector.broadcast %cst_52 : f32 to vector<8x128xf32>
      %102 = arith.addf %100, %101 : vector<8x128xf32>
      %103 = tpu.reciprocal %98 {approx = true} : vector<8x128xf32> -> vector<8x128xf32>
      %104 = arith.mulf %102, %103 : vector<8x128xf32>
      %cst_53 = arith.constant 1.000000e+00 : f32
      %105 = vector.broadcast %cst_53 : f32 to vector<8x128xf32>
      %106 = arith.subf %105, %104 : vector<8x128xf32>
      %c0_54 = arith.constant 0 : index
      %c0_55 = arith.constant 0 : index
      %107 = vector.load %arg11[%c0_54, %c0_55] : memref<8x8xf32, #tpu.memory_space<vmem>>, vector<1x8xf32>
      %cst_56 = arith.constant 9.99999997E-7 : f32
      %108 = vector.broadcast %cst_56 : f32 to vector<1x8xf32>
      %109 = arith.maximumf %107, %108 : vector<1x8xf32>
      %110 = tpu.reciprocal %109 {approx = true} : vector<1x8xf32> -> vector<1x8xf32>
      %c0_57 = arith.constant 0 : index
      %c0_58 = arith.constant 0 : index
      %111 = vector.load %arg10[%c0_57, %c0_58] : memref<8x8xf32, #tpu.memory_space<vmem>>, vector<8x8xf32>
      %cst_59 = arith.constant 1.000000e+00 : f32
      %112 = vector.broadcast %cst_59 : f32 to vector<8x8xf32>
      %113 = arith.addf %111, %112 : vector<8x8xf32>
      %114 = vector.broadcast %110 : vector<1x8xf32> to vector<8x8xf32>
      %115 = arith.mulf %113, %114 : vector<8x8xf32>
      %cst_60 = arith.constant 5.000000e+00 : f32
      %116 = vector.broadcast %cst_60 : f32 to vector<8x128xf32>
      %117 = arith.mulf %116, %88 : vector<8x128xf32>
      %cst_61 = arith.constant 2.000000e+00 : f32
      %118 = vector.broadcast %cst_61 : f32 to vector<8x128xf32>
      %119 = arith.mulf %118, %55 : vector<8x128xf32>
      %120 = arith.addf %117, %119 : vector<8x128xf32>
      %cst_62 = arith.constant 5.000000e+00 : f32
      %121 = vector.broadcast %cst_62 : f32 to vector<8x128xf32>
      %122 = arith.mulf %121, %106 : vector<8x128xf32>
      %123 = arith.addf %120, %122 : vector<8x128xf32>
      %c0_63 = arith.constant 0 : index
      %c0_64 = arith.constant 0 : index
      %c0_65 = arith.constant 0 : index
      %124 = vector.load %arg9[%c0_63, %c0_64, %c0_65] : memref<1x8x128xf32, #tpu.memory_space<vmem>>, vector<1x8x128xf32>
      %125 = vector.shape_cast %124 : vector<1x8x128xf32> to vector<8x128xf32>
      %126 = vector.shape_cast %123 : vector<8x128xf32> to vector<1x8x128xf32>
      tpu.vector_store %arg9[%c0_63, %c0_64, %c0_65], %126 {strides = array<i32>} : memref<1x8x128xf32, #tpu.memory_space<vmem>>, vector<1x8x128xf32>,
      %127 = vector.extract_strided_slice %123 {offsets = [0, 0], sizes = [8, 8], strides = [1, 1]} : vector<8x128xf32> to vector<8x8xf32>
      %cst_66 = arith.constant 1.000000e+00 : f32
      %128 = vector.broadcast %cst_66 : f32 to vector<8x8xf32>
      %129 = arith.mulf %128, %115 : vector<8x8xf32>
      %130 = arith.addf %127, %129 : vector<8x8xf32>
      %c0_67 = arith.constant 0 : index
      %c0_68 = arith.constant 0 : index
      %c0_69 = arith.constant 0 : index
      %131 = vector.load %arg9[%c0_67, %c0_68, %c0_69] : memref<1x8x128xf32, #tpu.memory_space<vmem>>, vector<1x8x8xf32>
      %132 = vector.shape_cast %131 : vector<1x8x8xf32> to vector<8x8xf32>
      %133 = vector.shape_cast %130 : vector<8x8xf32> to vector<1x8x8xf32>
      tpu.vector_store %arg9[%c0_67, %c0_68, %c0_69], %133 {strides = array<i32>} : memref<1x8x128xf32, #tpu.memory_space<vmem>>, vector<1x8x8xf32>,
    } else {
    }
    return
  }
  func.func @transform_0(%arg0: i32, %arg1: i32) -> (i32, i32, i32) {
    %c0_i32 = arith.constant 0 : i32
    %c0_i32_0 = arith.constant 0 : i32
    %c0_i32_1 = arith.constant 0 : i32
    return %arg0, %c0_i32, %c0_i32_0 : i32, i32, i32
  }
  func.func @transform_1(%arg0: i32, %arg1: i32) -> (i32, i32, i32) {
    %c0_i32 = arith.constant 0 : i32
    %c0_i32_0 = arith.constant 0 : i32
    %c0_i32_1 = arith.constant 0 : i32
    return %arg0, %c0_i32, %c0_i32_0 : i32, i32, i32
  }
  func.func @transform_2(%arg0: i32, %arg1: i32) -> (i32, i32, i32) {
    %c0_i32 = arith.constant 0 : i32
    %c0_i32_0 = arith.constant 0 : i32
    %c0_i32_1 = arith.constant 0 : i32
    return %arg0, %c0_i32, %c0_i32_0 : i32, i32, i32
  }
  func.func @transform_3(%arg0: i32, %arg1: i32) -> (i32, i32, i32) {
    %c0_i32 = arith.constant 0 : i32
    %c0_i32_0 = arith.constant 0 : i32
    %c0_i32_1 = arith.constant 0 : i32
    return %arg0, %c0_i32, %c0_i32_0 : i32, i32, i32
  }
  func.func @transform_4(%arg0: i32, %arg1: i32) -> (i32, i32, i32) {
    %c0_i32 = arith.constant 0 : i32
    %c0_i32_0 = arith.constant 0 : i32
    return %arg0, %c0_i32, %arg1 : i32, i32, i32
  }
  func.func @transform_5(%arg0: i32, %arg1: i32) -> (i32, i32, i32) {
    %c0_i32 = arith.constant 0 : i32
    %c0_i32_0 = arith.constant 0 : i32
    return %arg0, %c0_i32, %arg1 : i32, i32, i32
  }
  func.func @transform_6(%arg0: i32, %arg1: i32) -> (i32, i32, i32) {
    %c0_i32 = arith.constant 0 : i32
    %c0_i32_0 = arith.constant 0 : i32
    return %arg0, %c0_i32, %arg1 : i32, i32, i32
  }
  func.func @transform_7(%arg0: i32, %arg1: i32) -> (i32, i32, i32) {
    %c0_i32 = arith.constant 0 : i32
    %c0_i32_0 = arith.constant 0 : i32
    %c0_i32_1 = arith.constant 0 : i32
    return %arg0, %c0_i32, %c0_i32_0 : i32, i32, i32
  }
}

</mosaic_0001>

<bundles_post_ra>
// kernel: tpu_custom_call.1
= control target key start
LH: loop header
LB: loop body
LE: loop exit
PB: predicated region body
PF: predicated region fallthrough
CT: control target
= control target key end

     0   :  { %s2695_s0 = inlined_call_operand.hbm [shape: f32[2,8,128], index: 0, kind: input, shape index: {}]   ;;  %s2696_s1 = inlined_call_operand.hbm [shape: bf16[2,128,128], index: 1, kind: input, shape index: {}]   ;;  %s2697_s2 = inlined_call_operand.hbm [shape: f32[2,8,128], index: 2, kind: input, shape index: {}]   ;;  %s2698_s3 = inlined_call_operand.hbm [shape: bf16[2,128,128], index: 3, kind: input, shape index: {}]   ;;  %s2699_s4 = inlined_call_operand.hbm [shape: bf16[2,8,256], index: 4, kind: input, shape index: {}]   ;;  %s2700_s5 = inlined_call_operand.vmem [shape: bf16[2,8,256], index: 5, kind: input, shape index: {}]   ;;  %s2701_s6 = inlined_call_operand.hbm [shape: bf16[2,8,256], index: 6, kind: input, shape index: {}]   ;;  %s2702_s7 = inlined_call_operand.hbm [shape: f32[2,8,128], index: 7, kind: output, shape index: {}]  }
   0x1   :  { %2719 = sst [smem:[#allocation28_spill]] %s2696_s1 }
   0x2   :  { %2720 = sst [smem:[#allocation29_spill]] %s2698_s3 }
   0x3   :  { %12 = vsyncpa [#allocation5], 0 }
   0x4   :  { %14 = vsyncpa [#allocation5 + $0x1], 0 }
   0x5   :  { %15 = vsyncpa [#allocation8], 0 }
   0x6   :  { %17 = vsyncpa [#allocation8 + $0x1], 0 }
   0x7   :  { %18 = vsyncpa [#allocation11], 0 }
   0x8   :  { %20 = vsyncpa [#allocation11 + $0x1], 0 }
   0x9   :  { %21 = vsyncpa [#allocation14], 0 }
   0xa   :  { %23 = vsyncpa [#allocation14 + $0x1], 0 }
   0xb   :  { %24 = vsyncpa [#allocation6], 0 }
   0xc   :  { %26 = vsyncpa [#allocation6 + $0x1], 0  ;;  %s2100_s24 = smov 0   ;;  %s2102_s25 = smov 0  }
   0xd   :  { %s2104_s26 = smov 0   ;;  %s2106_s27 = smov 0  }
   0xe   :  { %s2108_s28 = smov 0   ;;  %s2110_s29 = smov 0  }
   0xf LB: > { %2721 = sst [smem:[#allocation21_spill]] %s2025_s24  ;;  %s2131_s30 = sadd.s32 4294967295, %s2045_s29   ;;  %s2045_s29 = sphi %s2110_s29, %s32_s29   ;;  %s2041_s28 = sphi %s2108_s28, %s2757_s28   ;;  %s2037_s27 = sphi %s2106_s27, %s2756_s27   ;;  %s2033_s26 = sphi %s2104_s26, %s2755_s26   ;;  %s2029_s25 = sphi %s2102_s25, %s2759_s25   ;;  %s2025_s24 = sphi %s2100_s24, %s2758_s24  }
  0x10   : > { %2722 = sst [smem:[#allocation22_spill]] %s2033_s26  ;;  %s1471_s8 = sadd.s32 4294967294, %s2045_s29  }
  0x11   : > { %2723 = sst [smem:[#allocation23_spill]] %s2041_s28  ;;  %s44_s9 = sadd.s32 1, %s2041_s28 }
  0x12   : > { %2724 = sst [smem:[#allocation24_spill]] %s2045_s29  ;;  %s51_s10 = sadd.s32 1, %s2033_s26 }
  0x13   : > { %p46_p0 = scmp.ge.s32.totalorder %s44_s9, 2  ;;  %p58_p1 = scmp.ne.s32.totalorder %s2033_s26, %s2029_s25 }
  0x14   : > { %p59_p2 = scmp.eq.s32.totalorder %s2045_s29, 0  ;;  %p64_p3 = scmp.ne.s32.totalorder %s2029_s25, %s2025_s24 }
  0x15   : > { %s2761_s9 = smov (%p46_p0, %s44_s9), 0  ;;  %p65_p5 = scmp.eq.s32.totalorder %s2131_s30, 0 }
  0x16   : > { %2725 = sst [smem:[#allocation25_spill]] %s2761_s9  ;;  %p2143_p4 = por %p59_p2, %p58_p1 }
  0x17   : > { %s48_s12 = ssub.s32 %s2041_s28, %s2761_s9  ;;  %p250_p6 = scmp.eq.s32.totalorder %s2131_s30, 1 }
  0x18   : > { %p49_p7 = scmp.eq.s32.totalorder %s48_s12, 0  ;;  %p2151_p8 = por %p65_p5, %p64_p3 }
  0x19   : > { %p2155_p9 = por %p250_p6, %p58_p1  ;;  %p256_p10 = scmp.eq.s32.totalorder %s1471_s8, 1 }
  0x1a   : > { %s2727_s13 = scalar_select %p2151_p8, 1, 0 }
  0x1b   : > { %s2728_s14 = scalar_select %p2155_p9, 1, 0 }
  0x1c   : > { %s2160_s15 = scalar_select %p49_p7, %s2033_s26, %s51_s10  }
  0x1d   : > { %p2162_p11 = por %p256_p10, %p64_p3  ;;  %p1681_p13 = scmp.lt.s32.totalorder %s2045_s29, 2 }
  0x1e   : > { %2729 = sst [smem:[#allocation26_spill]] %s2160_s15  ;;  %s2169_s17 = sand.u32 1, %s2033_s26  }
  0x1f   : > { %s2730_s16 = scalar_select %p2162_p11, 1, 0 }
  0x20   : > { %s2706_s18 = sand.u32 1, %s2045_s29   ;;  %s2704_s19 = sshll.u32 %s2169_s17, 6 }
  0x21   : > { %2731 = sst [smem:[#allocation27_spill]] %s2730_s16  ;;  %p2175_p0 = pnand %p1681_p13, %p2143_p4 }
  0x22   : > { %s2705_s21 = sshll.u32 %s2041_s28, 10  ;;  %s2733_s1 = sld [smem:[#allocation28_spill]] }
  0x23   : > { %s2732_s20 = scalar_select %p2175_p0, 1, 0 }
  0x24   : > { %s298_s10 = scalar_lea.vmem [#allocation7], %s2704_s19  ;;  %s2193_s11 = scalar_lea.sflag [#allocation8], %s2706_s18 }
  0x25   : > { %s305_s12 = sshll.u32 %s298_s10, 4  ;;  %p2199_p2 = pneg %p2175_p0  ;;  %s2189_s12 = int_to_ptr.vmem [resolvable:$true] %s305_s12 }
  0x28   : > { %s2185_s8 = scalar_lea.hbm %s2733_s1, %s2705_s21  ;;  %s1776_s10 = scalar_lea.hbm %s2733_s1, 2048 }
  0x29   : > { %s1771_s9 = scalar_lea.hbm %s2185_s8, 1024  ;;  %p1777_p5 = scmp.lt.u32.totalorder %s2185_s8, %s2733_s1 }
  0x2a   : > { %p1772_p1 = scmp.ne.s32.totalorder %s2185_s8, %s1771_s9  ;;  %p1778_p6 = scmp.lt.u32.totalorder %s1776_s10, %s1771_s9 }
  0x2b   : > { %p1780_p10 = scmp.lt.u32.totalorder %s1771_s9, %s2185_s8 }
  0x2c   : > { %p1774_p3 = pnand %p2199_p2, %p1772_p1  ;;  %p1779_p7 = por %p1778_p6, %p1777_p5 }
  0x2e   : > { %p1775_p4 = pneg %p1774_p3  ;;  %p1781_p13 = por %p1780_p10, %p1779_p7 }
  0x30   : > { %p1782_p12 = pnand %p1781_p13, %p1775_p4 }
  0x32   : > { %1785 = shalt.err (!%p1782_p12)
}
  0x33   : > { %s1786_s18 = scalar_lea.vmem %s2189_s12, 1024  ;;  %s2047_s22 = smov [#allocation7]  }
  0x34   : > { %p1787_p1 = scmp.ne.s32.totalorder %s2189_s12, %s1786_s18  ;;  %s1791_s23 = sshll.u32 %s2047_s22, 4  ;;  %s1792_s23 = int_to_ptr.vmem [resolvable:$false] %s1791_s23 }
  0x35   : > { %s1793_s19 = scalar_lea.vmem %s1792_s23, 2048  ;;  %p1794_p9 = scmp.lt.s32.totalorder %s2189_s12, %s1792_s23 }
  0x36   : > { %p1789_p3 = pnand %p1787_p1, %p2199_p2  ;;  %p1795_p8 = scmp.lt.s32.totalorder %s1793_s19, %s1786_s18 }
  0x38   : > { %p1790_p11 = pneg %p1789_p3  ;;  %p1796_p5 = por %p1795_p8, %p1794_p9 }
  0x3a   : > { %p1797_p6 = pnand %p1796_p5, %p1790_p11 }
  0x3c   : > { %1800 = shalt.err (!%p1797_p6)
}
  0x3d   : > { %s2711_s9 = smov 64   ;;  %s2712_s21 = smov 4  }
  0x3e   : > { %1664 = dma.hbm_to_vmem [thread:$0]  (!%p2175_p0), %s2185_s8, 1024, %s2189_s12, %s2193_s11, %s2711_s9, %s2711_s9, %s2712_s21  }
  0x3f   : > { %p1490_p8 = scmp.ge.s32.totalorder %s2045_s29, 1  ;;  %p407_p9 = scmp.lt.s32.totalorder %s2045_s29, 3 }
  0x40   : > { %s2736_s10 = sshll.u32 %s2041_s28, 10  ;;  %s2737_s3 = sld [smem:[#allocation29_spill]] }
  0x41   : > { %p2228_p11 = pnand %p1490_p8, %p407_p9  ;;  %s2738_s1 = sshll.u32 %s2169_s17, 6 }
  0x42   : > { %s337_s26 = scalar_lea.vmem [#allocation10], %s2738_s1  ;;  %s2739_s8 = sand.u32 1, %s2045_s29  }
  0x43   : > { %s2735_s18 = scalar_select %p2228_p11, 1, 0 }
  0x44   : > { %s344_s16 = sshll.u32 %s337_s26, 4  ;;  %s2245_s12 = scalar_lea.sflag [#allocation11], %s2739_s8  ;;  %s2241_s16 = int_to_ptr.vmem [resolvable:$true] %s344_s16 }
  0x46   : > { %s2237_s19 = scalar_lea.hbm %s2737_s3, %s2736_s10  ;;  %s1806_s23 = scalar_lea.hbm %s2737_s3, 2048 }
  0x47   : > { %s1801_s9 = scalar_lea.hbm %s2237_s19, 1024  ;;  %p1807_p10 = scmp.lt.u32.totalorder %s2237_s19, %s2737_s3 }
  0x48   : > { %p1802_p12 = scmp.ne.s32.totalorder %s2237_s19, %s1801_s9  ;;  %p1808_p13 = scmp.lt.u32.totalorder %s1806_s23, %s1801_s9 }
  0x49   : > { %p1810_p3 = scmp.lt.u32.totalorder %s1801_s9, %s2237_s19 }
  0x4a   : > { %p1804_p4 = pnand %p1802_p12, %p2199_p2  ;;  %p1809_p1 = por %p1808_p13, %p1807_p10 }
  0x4c   : > { %p1805_p7 = pneg %p1804_p4  ;;  %p1811_p5 = por %p1810_p3, %p1809_p1 }
  0x4e   : > { %p1812_p6 = pnand %p1811_p5, %p1805_p7 }
  0x50   : > { %1815 = shalt.err (!%p1812_p6)
}
  0x51   : > { %s1816_s1 = scalar_lea.vmem %s2241_s16, 1024  ;;  %s2050_s26 = smov [#allocation10]  }
  0x52   : > { %p1817_p8 = scmp.ne.s32.totalorder %s2241_s16, %s1816_s1  ;;  %s1821_s8 = sshll.u32 %s2050_s26, 4  ;;  %s1822_s8 = int_to_ptr.vmem [resolvable:$false] %s1821_s8 }
  0x53   : > { %s1823_s24 = scalar_lea.vmem %s1822_s8, 2048  ;;  %p1824_p4 = scmp.lt.s32.totalorder %s2241_s16, %s1822_s8 }
  0x54   : > { %p1819_p9 = pnand %p1817_p8, %p2199_p2  ;;  %p1825_p11 = scmp.lt.s32.totalorder %s1823_s24, %s1816_s1 }
  0x56   : > { %p1820_p12 = pneg %p1819_p9  ;;  %p1826_p10 = por %p1825_p11, %p1824_p4 }
  0x58   : > { %p1827_p13 = pnand %p1826_p10, %p1820_p12 }
  0x5a   : > { %1830 = shalt.err (!%p1827_p13)
}
  0x5b   : > { %s2740_s9 = smov 4   ;;  %s2741_s21 = smov 64  }
  0x5c   : > { %1670 = dma.hbm_to_vmem [thread:$0]  (!%p2175_p0), %s2237_s19, 1024, %s2241_s16, %s2245_s12, %s2741_s21, %s2741_s21, %s2740_s9  }
  0x5d   : > { %s2273_s22 = sshll.u32 %s2169_s17, 3  ;;  %s2276_s10 = sshll.u32 %s2041_s28, 7 }
  0x5e   : > { %s2282_s26 = scalar_lea.hbm %s2695_s0, %s2276_s10  ;;  %s280_s8 = scalar_lea.vmem [#allocation4], %s2273_s22 }
  0x5f   : > { %s287_s24 = sshll.u32 %s280_s8, 4  ;;  %s277_s3 = scalar_lea.sflag [#allocation5], %s2169_s17  ;;  %s288_s24 = int_to_ptr.vmem [resolvable:$true] %s287_s24 }
  0x60   : > { %s1831_s16 = scalar_lea.hbm %s2282_s26, 128  ;;  %s1836_s21 = scalar_lea.hbm %s2695_s0, 256 }
  0x61   : > { %p1832_p11 = scmp.ne.s32.totalorder %s2282_s26, %s1831_s16  ;;  %p1837_p3 = scmp.lt.u32.totalorder %s2282_s26, %s2695_s0 }
  0x62   : > { %p1838_p5 = scmp.lt.u32.totalorder %s1836_s21, %s1831_s16  ;;  %p1840_p8 = scmp.lt.u32.totalorder %s1831_s16, %s2282_s26 }
  0x63   : > { %p1834_p7 = pnand %p1832_p11, %p2199_p2 }
  0x64   : > { %p1839_p6 = por %p1838_p5, %p1837_p3 }
  0x65   : > { %p1835_p1 = pneg %p1834_p7 }
  0x66   : > { %p1841_p9 = por %p1840_p8, %p1839_p6 }
  0x68   : > { %p1842_p12 = pnand %p1841_p9, %p1835_p1 }
  0x6a   : > { %1845 = shalt.err (!%p1842_p12)
}
  0x6b   : > { %s1846_s8 = scalar_lea.vmem %s288_s24, 128  ;;  %s2051_s28 = smov [#allocation4]  }
  0x6c   : > { %p1847_p4 = scmp.ne.s32.totalorder %s288_s24, %s1846_s8  ;;  %s1851_s29 = sshll.u32 %s2051_s28, 4  ;;  %s1852_s29 = int_to_ptr.vmem [resolvable:$false] %s1851_s29 }
  0x6d   : > { %s1853_s19 = scalar_lea.vmem %s1852_s29, 256  ;;  %p1854_p11 = scmp.lt.s32.totalorder %s288_s24, %s1852_s29 }
  0x6e   : > { %p1849_p10 = pnand %p1847_p4, %p2199_p2  ;;  %p1855_p7 = scmp.lt.s32.totalorder %s1853_s19, %s1846_s8 }
  0x70   : > { %p1850_p13 = pneg %p1849_p10  ;;  %p1856_p0 = por %p1855_p7, %p1854_p11 }
  0x72   : > { %p1857_p3 = pnand %p1856_p0, %p1850_p13 }
  0x74   : > { %1860 = shalt.err (!%p1857_p3)
}
  0x75   : > { %p2742_p5 = scmp.ne.s32.totalorder %s2732_s20, 0  ;;  %s2307_s21 = scalar_lea.hbm %s2697_s2, %s2276_s10 }
  0x76   : > { %s319_s28 = scalar_lea.vmem [#allocation9], %s2273_s22  ;;  %s1861_s23 = scalar_lea.hbm %s2307_s21, 128 }
  0x77   : > { %1661 = dma.hbm_to_vmem [thread:$0]  (!%p2742_p5), %s2282_s26, 128, %s288_s24, %s277_s3  }
  0x78   : > { %s326_s29 = sshll.u32 %s319_s28, 4  ;;  %p1862_p0 = scmp.ne.s32.totalorder %s2307_s21, %s1861_s23  ;;  %s327_s29 = int_to_ptr.vmem [resolvable:$true] %s326_s29 }
  0x79   : > { %s1866_s3 = scalar_lea.hbm %s2697_s2, 256  ;;  %p1867_p8 = scmp.lt.u32.totalorder %s2307_s21, %s2697_s2 }
  0x7a   : > { %p1864_p1 = pnand %p1862_p0, %p2199_p2  ;;  %p1868_p9 = scmp.lt.u32.totalorder %s1866_s3, %s1861_s23 }
  0x7b   : > { %p1870_p4 = scmp.lt.u32.totalorder %s1861_s23, %s2307_s21 }
  0x7c   : > { %p1865_p6 = pneg %p1864_p1  ;;  %p1869_p12 = por %p1868_p9, %p1867_p8 }
  0x7e   : > { %p1871_p10 = por %p1870_p4, %p1869_p12 }
  0x80   : > { %p1872_p13 = pnand %p1871_p10, %p1865_p6 }
  0x82   : > { %1875 = shalt.err (!%p1872_p13)
}
  0x83   : > { %s1876_s19 = scalar_lea.vmem %s327_s29, 128  ;;  %s2052_s16 = smov [#allocation9]  }
  0x84   : > { %p1877_p11 = scmp.ne.s32.totalorder %s327_s29, %s1876_s19  ;;  %s1881_s9 = sshll.u32 %s2052_s16, 4  ;;  %s1882_s9 = int_to_ptr.vmem [resolvable:$false] %s1881_s9 }
  0x85   : > { %s1883_s28 = scalar_lea.vmem %s1882_s9, 256  ;;  %p1884_p0 = scmp.lt.s32.totalorder %s327_s29, %s1882_s9 }
  0x86   : > { %p1879_p7 = pnand %p1877_p11, %p2199_p2  ;;  %p1885_p1 = scmp.lt.s32.totalorder %s1883_s28, %s1876_s19 }
  0x88   : > { %p1880_p3 = pneg %p1879_p7  ;;  %p1886_p5 = por %p1885_p1, %p1884_p0 }
  0x8a   : > { %p1887_p8 = pnand %p1886_p5, %p1880_p3 }
  0x8c   : > { %1890 = shalt.err (!%p1887_p8)
}
  0x8d   : > { %p2743_p9 = scmp.ne.s32.totalorder %s2732_s20, 0  ;;  %s2332_s8 = scalar_lea.hbm %s2699_s4, %s2276_s10 }
  0x8e   : > { %s358_s3 = scalar_lea.vmem [#allocation12], %s2273_s22  ;;  %s1891_s24 = scalar_lea.hbm %s2332_s8, 128 }
  0x8f   : > { %1667 = dma.hbm_to_vmem [thread:$0]  (!%p2743_p9), %s2307_s21, 128, %s327_s29, %s2193_s11  }
  0x90   : > { %s368_s26 = sshll.u32 %s358_s3, 4  ;;  %p1892_p5 = scmp.ne.s32.totalorder %s2332_s8, %s1891_s24  ;;  %s369_s26 = int_to_ptr.vmem [resolvable:$true] %s368_s26 }
  0x91   : > { %s1896_s11 = scalar_lea.hbm %s2699_s4, 256  ;;  %p1897_p4 = scmp.lt.u32.totalorder %s2332_s8, %s2699_s4 }
  0x92   : > { %p1894_p6 = pnand %p1892_p5, %p2199_p2  ;;  %p1898_p10 = scmp.lt.u32.totalorder %s1896_s11, %s1891_s24 }
  0x93   : > { %p1900_p11 = scmp.lt.u32.totalorder %s1891_s24, %s2332_s8 }
  0x94   : > { %p1895_p12 = pneg %p1894_p6  ;;  %p1899_p13 = por %p1898_p10, %p1897_p4 }
  0x96   : > { %p1901_p7 = por %p1900_p11, %p1899_p13 }
  0x98   : > { %p1902_p3 = pnand %p1901_p7, %p1895_p12 }
  0x9a   : > { %1905 = shalt.err (!%p1902_p3)
}
  0x9b   : > { %s1906_s9 = scalar_lea.vmem %s369_s26, 128  ;;  %s2053_s28 = smov [#allocation12]  }
  0x9c   : > { %p1907_p0 = scmp.ne.s32.totalorder %s369_s26, %s1906_s9  ;;  %s1911_s23 = sshll.u32 %s2053_s28, 4  ;;  %s1912_s23 = int_to_ptr.vmem [resolvable:$false] %s1911_s23 }
  0x9d   : > { %s1913_s1 = scalar_lea.vmem %s1912_s23, 256  ;;  %p1914_p5 = scmp.lt.s32.totalorder %s369_s26, %s1912_s23 }
  0x9e   : > { %p1909_p1 = pnand %p1907_p0, %p2199_p2  ;;  %p1915_p6 = scmp.lt.s32.totalorder %s1913_s1, %s1906_s9 }
  0xa0   : > { %p1910_p8 = pneg %p1909_p1  ;;  %p1916_p9 = por %p1915_p6, %p1914_p5 }
  0xa2   : > { %p1917_p4 = pnand %p1916_p9, %p1910_p8 }
  0xa4   : > { %1920 = shalt.err (!%p1917_p4)
}
  0xa5   : > { %p2744_p10 = scmp.ne.s32.totalorder %s2732_s20, 0  ;;  %s2357_s19 = scalar_lea.hbm %s2701_s6, %s2276_s10 }
  0xa6   : > { %s392_s16 = scalar_lea.vmem [#allocation13], %s2273_s22  ;;  %s389_s21 = scalar_lea.sflag [#allocation14], %s2169_s17 }
  0xa7   : > { %1673 = dma.hbm_to_vmem [thread:$0]  (!%p2744_p10), %s2332_s8, 128, %s369_s26, %s2245_s12  }
  0xa8   : > { %s402_s11 = sshll.u32 %s392_s16, 4  ;;  %s1921_s29 = scalar_lea.hbm %s2357_s19, 128  ;;  %s403_s11 = int_to_ptr.vmem [resolvable:$true] %s402_s11 }
  0xa9   : > { %p1922_p9 = scmp.ne.s32.totalorder %s2357_s19, %s1921_s29  ;;  %s1926_s8 = scalar_lea.hbm %s2701_s6, 256 }
  0xaa   : > { %p1927_p11 = scmp.lt.u32.totalorder %s2357_s19, %s2701_s6  ;;  %p1928_p7 = scmp.lt.u32.totalorder %s1926_s8, %s1921_s29 }
  0xab   : > { %p1924_p12 = pnand %p1922_p9, %p2199_p2  ;;  %p1930_p0 = scmp.lt.u32.totalorder %s1921_s29, %s2357_s19 }
  0xac   : > { %p1929_p3 = por %p1928_p7, %p1927_p11 }
  0xad   : > { %p1925_p13 = pneg %p1924_p12 }
  0xae   : > { %p1931_p1 = por %p1930_p0, %p1929_p3 }
  0xb0   : > { %p1932_p8 = pnand %p1931_p1, %p1925_p13 }
  0xb2   : > { %1935 = shalt.err (!%p1932_p8)
}
  0xb3   : > { %s1936_s17 = scalar_lea.vmem %s403_s11, 128  ;;  %s2054_s22 = smov [#allocation13]  }
  0xb4   : > { %p1937_p5 = scmp.ne.s32.totalorder %s403_s11, %s1936_s17  ;;  %s1941_s28 = sshll.u32 %s2054_s22, 4  ;;  %s1942_s28 = int_to_ptr.vmem [resolvable:$false] %s1941_s28 }
  0xb5   : > { %s1943_s23 = scalar_lea.vmem %s1942_s28, 256  ;;  %p1944_p9 = scmp.lt.s32.totalorder %s403_s11, %s1942_s28 }
  0xb6   : > { %p1939_p6 = pnand %p1937_p5, %p2199_p2  ;;  %p1945_p12 = scmp.lt.s32.totalorder %s1943_s23, %s1936_s17 }
  0xb8   : > { %p1940_p4 = pneg %p1939_p6  ;;  %p1946_p10 = por %p1945_p12, %p1944_p9 }
  0xba   : > { %p1947_p7 = pnand %p1946_p10, %p1940_p4 }
  0xbc   : > { %1950 = shalt.err (!%p1947_p7)
}
  0xbd   : > { %p2745_p11 = scmp.ne.s32.totalorder %s2732_s20, 0  ;;  %p2746_p13 = scmp.ne.s32.totalorder %s2735_s18, 0 }
  0xbe   : > { %s2381_s15 = sand.u32 (!%p2746_p13), 1, %s2029_s25   ;;  %p2747_p2 = scmp.ne.s32.totalorder (!%p2746_p13), %s2727_s13, 0 }
  0xbf   : > { %1676 = dma.hbm_to_vmem [thread:$0]  (!%p2745_p11), %s2357_s19, 128, %s403_s11, %s389_s21  }
  0xc0   : > { %411 = sbr.rel (%p2746_p13) target bundleno = 828 (0x33c), region = 48  ;;  %s2384_s1 = sshll.u32 (!%p2746_p13), %s2381_s15, 3 }
  0xc1   : > { %s414_s3 = scalar_lea.sflag (!%p2746_p13), [#allocation5], %s2381_s15  ;;  %s417_s24 = scalar_lea.vmem (!%p2746_p13), [#allocation4], %s2384_s1 }
  0xc7   : > { %2004 = dma.done.wait (%p2747_p2), %s414_s3, 128  }
  0xc8   : > { %2006 = vsyncadd (%p2747_p2), %s414_s3, 4294967168  ;;  %s422_s20 = sand.u32 1, %s2131_s30   ;;  %s1492_s18 = sshll.u32 %s2381_s15, 6 }
  0xc9   : > { %s423_s19 = scalar_lea.sflag [#allocation8], %s422_s20  ;;  %s2394_s16 = scalar_lea.vmem [#allocation7], %s1492_s18 }
  0xca   : > { %2008 = dma.done.wait (%p2747_p2), %s423_s19, 1152  }
  0xcb   : > { %2010 = vsyncadd (%p2747_p2), %s423_s19, 4294966144  ;;  %s435_s11 = scalar_lea.vmem [#allocation9], %s2384_s1  ;;  %s441_s21 = scalar_lea.sflag [#allocation11], %s422_s20 }
  0xcc   : > { %s2401_s29 = scalar_lea.vmem [#allocation10], %s1492_s18 }
  0xcd   : > { %2012 = dma.done.wait (%p2747_p2), %s441_s21, 1152  }
  0xce   : > { %2014 = vsyncadd (%p2747_p2), %s441_s21, 4294966144  ;;  %s453_s30 = scalar_lea.vmem [#allocation12], %s2384_s1  ;;  %s459_s9 = scalar_lea.sflag [#allocation14], %s2381_s15 }
  0xcf   : > { %s462_s12 = scalar_lea.vmem [#allocation13], %s2384_s1 }
  0xd0   : > { %2016 = dma.done.wait (%p2747_p2), %s459_s9, 128  }
  0xd1   : > { %2018 = vsyncadd (%p2747_p2), %s459_s9, 4294967168  ;;  %v2414_v0 = vld [vmem:[%s417_s24] sm:$0xff]  ;;  %v2417_v1 = vld [vmem:[%s462_s12] sm:$0xff]  ;;  %v2055_v4 = vmov 1065369472   ;;  %v2056_v5 = vmov 0.0   ;;  %v564_v29 = vlaneseq }
  0xd2   : > { %884 = vmax.xlane.f32.xlu0 %v2414_v0  ;;  %v1501_v2 = vcombine.high %v2417_v1, %v2417_v1  ;;  %v1500_v3 = vcombine.low %v2417_v1, %v2417_v1  ;;  %808 = vmatprep.mubr.bf16.mxu0 %v2055_v4  ;;  %v1742_v6 = vld [vmem:[%s2394_s16] sm:$0xff]   ;;  %vm2057_vm0 = vmmov 0   ;;  %v1744_v7 = vld [vmem:[%s2394_s16 + $0x8] sm:$0xff]   ;;  %v2432_v8 = vld [vmem:[%s2401_s29] sm:$0xff]   ;;  %v2058_v27 = vmov 1966171168  }
  0xd3   : > { %1564 = vmatprep.subr.bf16.mxu1 %v2056_v5  ;;  %1580 = vmatprep.mubr.msk.bf16.mxu1 %vm2057_vm0, %v2056_v5  ;;  %v1746_v9 = vld [vmem:[%s2394_s16 + $0x10] sm:$0xff]   ;;  %v2442_v10 = vld [vmem:[%s2401_s29 + $0x8] sm:$0xff]   ;;  %v2449_v12 = vld [vmem:[%s2401_s29 + $0x10] sm:$0xff]   ;;  %v562_v28 = vunpack.c.l.s4 %v2058_v27  ;;  %v2511_v34 = vshrl.u32 %v564_v29, 7  ;;  %p529_p10 = scmp.lt.s32.totalorder %s2037_s27, 1  ;;  %v2541_v48 = vunpack.c.l.bf16 %v2417_v1  ;;  %v2544_v50 = vunpack.c.h.bf16 %v2417_v1  ;;  %s1520_s22 = sshll.u32 %s2037_s27, 7 }
  0xd4   : > { %776 = vmatprep.subr.bf16.mxu0 %v1501_v2  ;;  %1565 = vmatpush3.bf16.xpose.msra.mxu1 %v1742_v6  ;;  %v1748_v11 = vld [vmem:[%s2394_s16 + $0x18] sm:$0xff]   ;;  %v1750_v13 = vld [vmem:[%s2394_s16 + $0x20] sm:$0xff]   ;;  %v2456_v14 = vld [vmem:[%s2401_s29 + $0x18] sm:$0xff]   ;;  %vm545_vm3 = vcmask 64512   ;;  %vm859_vm4 = vcmask 1041409   ;;  %vm861_vm5 = vcmask 1042434   ;;  %s2645_s20 = scalar_lea.hbm %s2702_s7, %s1520_s22 }
  0xd5   : > { %777 = vmatpush1.bf16.xpose.msra.mxu0 %v1500_v3  ;;  %1566 = vmatprep.subr.bf16.mxu1 %v2056_v5  ;;  %v1752_v15 = vld [vmem:[%s2394_s16 + $0x28] sm:$0xff]   ;;  %v2463_v16 = vld [vmem:[%s2401_s29 + $0x20] sm:$0xff]   ;;  %v2470_v18 = vld [vmem:[%s2401_s29 + $0x28] sm:$0xff]   ;;  %v563_v33 = vunpack.c.0.s8 %v562_v28  ;;  %s530_s13 = scalar_select %p529_p10, %s2037_s27, 1  ;;  %v2528_v40 = vsub.s32 0, %v2511_v34  ;;  %v2531_v41 = vsub.s32 1, %v2511_v34 }
  0xd6   : > { %1584 = vmatprep.subr.bf16.mxu0 %v2056_v5  ;;  %v1753_v17 = vld [vmem:[%s2394_s16 + $0x30] sm:$0xff]   ;;  %v2476_v19 = vld [vmem:[%s2401_s29 + $0x30] sm:$0xff]   ;;  %v2481_v20 = vld [vmem:[%s2401_s29 + $0x38] sm:$0xff]   ;;  %547 = vst.msk [vmem:[#allocation3] sm:$0xff] %vm545_vm3, %v2056_v5  ;;  %vm863_vm6 = vcmask 1043459   ;;  %vm865_vm7 = vcmask 1044484  }
  0xd7   : > { %v2487_v21 = vld [vmem:[%s435_s11] sm:$0xff]  ;;  %v548_v30 = vld [vmem:[%s453_s30] sm:$0xff]  ;;  %v2518_v37 = vsub.s32 %v563_v33, %v2511_v34  ;;  %s1527_s8 = sshll.u32 %s530_s13, 3  ;;  %546 = vst.msk [vmem:[#allocation2] sm:$0xff] %vm545_vm3, %v2056_v5  ;;  %vm867_vm8 = vcmask 1045509   ;;  %vm869_vm9 = vcmask 1046534  }
  0xd8   : > { %v1022_v22 = vpack.c.bf16 %v2487_v21, %v2487_v21  ;;  %v1510_v26 = vmul.f32 -1.442695, %v2487_v21  ;;  %v549_v31 = vunpack.c.l.bf16 %v548_v30  ;;  %v550_v32 = vunpack.c.h.bf16 %v548_v30  ;;  %s536_s17 = scalar_lea.vmem %s2700_s5, %s1527_s8  ;;  %s526_s28 = scalar_lea.vmem [#allocation15], %s2384_s1 }
  0xd9   : > { %v551_v42 = vld [vmem:[%s536_s17] sm:$0xff]  ;;  %vm1153_vm2 = vcmp.ne.f32.partialorder %v2487_v21, %v2487_v21  ;;  %vm871_vm10 = vcmask 1047559   ;;  %s1259_s23 = sshll.u32 %s526_s28, 4  ;;  %s1246_s18 = scalar_lea.sflag [#allocation6], %s2381_s15  ;;  %s2647_s23 = int_to_ptr.vmem [resolvable:$true] %s1259_s23 }
  0xda   : > { %v559_v36 = vcombine.low %v549_v31, %v550_v32  ;;  %v2534_v43 = vunpack.c.l.bf16 %v551_v42  ;;  %v2536_v44 = vunpack.c.h.bf16 %v551_v42  ;;  %v560_v59 = vcombine.high %v549_v31, %v550_v32  ;;  %s1951_s27 = scalar_lea.vmem %s2647_s23, 128  ;;  %p2748_p0 = scmp.ne.s32.totalorder %s2728_s14, 0 }
  0xdb   : > { %p1952_p3 = scmp.ne.s32.totalorder %s2647_s23, %s1951_s27  ;;  %s2059_s1 = smov [#allocation15]  }
  0xdc   : > { %809 = vmatmul.mubr.bf16.vlgmr.msra.gmra.mrb[0].mxu0 %v2055_v4  ;;  %1567 = vmatpush3.bf16.xpose.msra.mxu1 %v1744_v7  ;;  %v567_v38 = vrot.slane %v559_v36, %v2518_v37  ;;  %v574_v2 = vrot.slane %v560_v59, %v2518_v37  ;;  %s1955_s19 = sshll.u32 %s2059_s1, 4  ;;  %s1956_s19 = int_to_ptr.vmem [resolvable:$false] %s1955_s19 }
  0xdd   : > { %1585 = vmatpush3.bf16.xpose.msra.mxu0 %v2432_v8  ;;  %1568 = vmatprep.subr.bf16.mxu1 %v2056_v5  ;;  %p1953_p1 = pnand %p1952_p3, %p2748_p0  ;;  %p1958_p5 = scmp.lt.s32.totalorder %s2647_s23, %s1956_s19 }
  0xde   : > { %1586 = vmatprep.subr.bf16.mxu0 %v2056_v5  ;;  %1600 = vmatprep.mubr.msk.bf16.mxu0 %vm2057_vm0, %v2056_v5  ;;  %v583_v39 = vrot.slane %v567_v38, %v2518_v37  ;;  %v575_v49 = vcombine.high %v567_v38, %v567_v38 }
  0xdf   : > { %p1954_p8 = pneg %p1953_p1 }
  0xe0   : > { %v612_v45 = vrot.slane %v583_v39, %v2528_v40  ;;  %v616_v46 = vrot.slane %v583_v39, %v2531_v41  ;;  %v597_v54 = vrot.slane %v575_v49, %v2518_v37  ;;  %v605_v62 = vcombine.high %v583_v39, %v583_v39 }
  0xe2   : > { %v689_v51 = vsub.f32 %v612_v45, %v2534_v43  ;;  %v690_v52 = vsub.f32 %v616_v46, %v2536_v44  ;;  %v620_v57 = vrot.slane %v597_v54, %v2528_v40  ;;  %v624_v58 = vrot.slane %v597_v54, %v2531_v41 }
  0xe3   : > { %v607_v1 = vcombine.high %v597_v54, %v597_v54  ;;  %v628_v6 = vrot.slane %v605_v62, %v2528_v40  ;;  %v632_v7 = vrot.slane %v605_v62, %v2531_v41 }
  0xe4   : > { %1569 = vmatpush3.bf16.xpose.msra.mxu1 %v1746_v9  ;;  %v705_v55 = vand.u32 2147483647, %v689_v51  ;;  %v706_v56 = vand.u32 2147483647, %v690_v52  ;;  %v691_v63 = vsub.f32 %v620_v57, %v2534_v43 }
  0xe5   : > { %1587 = vmatpush3.bf16.xpose.msra.mxu0 %v2442_v10  ;;  %1570 = vmatprep.subr.bf16.mxu1 %v2056_v5 }
  0xe6   : > { %1588 = vmatprep.subr.bf16.mxu0 %v2056_v5  ;;  %v721_v60 = vmul.f32 %v705_v55, %v2541_v48  ;;  %v722_v61 = vmul.f32 %v706_v56, %v2544_v50  ;;  %v707_v9 = vand.u32 2147483647, %v691_v63 }
  0xe8   : > { %v737_v3 = vadd.f32 %v722_v61, %v721_v60 }
  0xea   : > { %738 = vadd.xlane.f32.xlu1 %v737_v3 }
  0xec   : > { %1571 = vmatpush3.bf16.xpose.msra.mxu1 %v1748_v11 }
  0xed   : > { %1589 = vmatpush3.bf16.xpose.msra.mxu0 %v2449_v12  ;;  %1572 = vmatprep.subr.bf16.mxu1 %v2056_v5 }
  0xee   : > { %1590 = vmatprep.subr.bf16.mxu0 %v2056_v5 }
  0xf4   : > { %1573 = vmatpush3.bf16.xpose.msra.mxu1 %v1750_v13  ;;  %v1754_v13 = vld [vmem:[%s2394_s16 + $0x38] sm:$0xff]   ;;  %s1957_s16 = scalar_lea.vmem %s1956_s19, 256 }
  0xf5   : > { %1591 = vmatpush3.bf16.xpose.msra.mxu0 %v2456_v14  ;;  %1574 = vmatprep.subr.bf16.mxu1 %v2056_v5  ;;  %p1959_p6 = scmp.lt.s32.totalorder %s1957_s16, %s1951_s27 }
  0xf6   : > { %1592 = vmatprep.subr.bf16.mxu0 %v2056_v5 }
  0xf7   : > { %p1960_p4 = por %p1959_p6, %p1958_p5 }
  0xf9   : > { %p1961_p9 = pnand %p1960_p4, %p1954_p8 }
  0xfc   : > { %1575 = vmatpush3.bf16.xpose.msra.mxu1 %v1752_v15  ;;  %v636_v15 = vrot.slane %v607_v1, %v2528_v40 }
  0xfd   : > { %1593 = vmatpush3.bf16.xpose.msra.mxu0 %v2463_v16  ;;  %1576 = vmatprep.subr.bf16.mxu1 %v2056_v5 }
  0xfe   : > { %1594 = vmatprep.subr.bf16.mxu0 %v2056_v5  ;;  %v695_v27 = vsub.f32 %v636_v15, %v2534_v43 }
 0x100   : > { %v711_v38 = vand.u32 2147483647, %v695_v27 }
 0x102   : > { %v727_v52 = vmul.f32 %v711_v38, %v2541_v48 }
 0x104   : > { %1577 = vmatpush3.bf16.xpose.msra.mxu1 %v1753_v17  ;;  %v640_v17 = vrot.slane %v607_v1, %v2531_v41 }
 0x105   : > { %1595 = vmatpush3.bf16.xpose.msra.mxu0 %v2470_v18  ;;  %1578 = vmatprep.subr.bf16.mxu1 %v2056_v5 }
 0x106   : > { %1596 = vmatprep.subr.bf16.mxu0 %v2056_v5  ;;  %v696_v28 = vsub.f32 %v640_v17, %v2536_v44 }
 0x108   : > { %v712_v39 = vand.u32 2147483647, %v696_v28 }
 0x10c   : > { %1579 = vmatpush3.bf16.xpose.msra.mxu1 %v1754_v13 }
 0x10d   : > { %1597 = vmatpush3.bf16.xpose.msra.mxu0 %v2476_v19  ;;  %1604 = vmatprep.subr.bf16.mxu1 %v2056_v5 }
 0x10e   : > { %1598 = vmatprep.subr.bf16.mxu0 %v2056_v5 }
 0x115   : > { %1599 = vmatpush3.bf16.xpose.msra.mxu0 %v2481_v20 }
 0x116   : > { %1624 = vmatprep.subr.bf16.mxu0 %v2056_v5 }
 0x11c   : > { %1601 = vmatmul.mubr.bf16.vlgmr.msra.gmra.mrb[4].mxu0 %v1022_v22  ;;  %v694_v22 = vsub.f32 %v632_v7, %v2536_v44 }
 0x11d   : > { %1625 = vmatpush3.bf16.xpose.msra.mxu0 %v2432_v8  ;;  %1640 = vmatprep.mubr.msk.bf16.mxu0 %vm2057_vm0, %v2056_v5 }
 0x11e   : > { %1626 = vmatprep.subr.bf16.mxu0 %v2056_v5  ;;  %v710_v31 = vand.u32 2147483647, %v694_v22 }
 0x125   : > { %1627 = vmatpush3.bf16.xpose.msra.mxu0 %v2442_v10 }
 0x126   : > { %1628 = vmatprep.subr.bf16.mxu0 %v2056_v5 }
 0x12d   : > { %1629 = vmatpush3.bf16.xpose.msra.mxu0 %v2449_v12 }
 0x12e   : > { %1630 = vmatprep.subr.bf16.mxu0 %v2056_v5 }
 0x135   : > { %1631 = vmatpush3.bf16.xpose.msra.mxu0 %v2456_v14 }
 0x136   : > { %1632 = vmatprep.subr.bf16.mxu0 %v2056_v5 }
 0x13d   : > { %1633 = vmatpush3.bf16.xpose.msra.mxu0 %v2463_v16 }
 0x13e   : > { %1634 = vmatprep.subr.bf16.mxu0 %v2056_v5 }
 0x145   : > { %1635 = vmatpush3.bf16.xpose.msra.mxu0 %v2470_v18 }
 0x146   : > { %1636 = vmatprep.subr.bf16.mxu0 %v2056_v5 }
 0x14d   : > { %1637 = vmatpush3.bf16.xpose.msra.mxu0 %v2476_v19 }
 0x14e   : > { %1638 = vmatprep.subr.bf16.mxu0 %v2056_v5 }
 0x155   : > { %1639 = vmatpush3.bf16.xpose.msra.mxu0 %v2481_v20 }
 0x15c   : > { %1641 = vmatmul.mubr.bf16.vlgmr.msra.gmra.mrb[8].mxu0 %v2055_v4  ;;  %v693_v4 = vsub.f32 %v628_v6, %v2534_v43 }
 0x15e   : > { %v709_v30 = vand.u32 2147483647, %v693_v4 }
 0x15f   : > { %v885_v23 = vpop.xlane.xlu0 %884 }
 0x160   : > { %v886_v24 = vsub.f32 %v2414_v0, %v885_v23  ;;  %v692_v0 = vsub.f32 %v624_v58, %v2536_v44  ;;  %v590_v23 = vrot.slane %v574_v2, %v2518_v37  ;;  %v725_v46 = vmul.f32 %v709_v30, %v2541_v48 }
 0x162   : > { %v887_v25 = vmul.f32 1.442695, %v886_v24  ;;  %v708_v11 = vand.u32 2147483647, %v692_v0  ;;  %v576_v24 = vcombine.high %v574_v2, %v574_v2  ;;  %v644_v32 = vrot.slane %v590_v23, %v2528_v40 }
 0x163   : > { %v648_v33 = vrot.slane %v590_v23, %v2531_v41  ;;  %v606_v60 = vcombine.high %v590_v23, %v590_v23 }
 0x164   : > { %1755 = vpow2.f32 %v887_v25  ;;  %v723_v25 = vmul.f32 %v707_v9, %v2541_v48  ;;  %v604_v42 = vrot.slane %v576_v24, %v2518_v37  ;;  %v697_v49 = vsub.f32 %v644_v32, %v2534_v43 }
 0x165   : > { %1757 = vpow2.f32 %v1510_v26  ;;  %v724_v26 = vmul.f32 %v708_v11, %v2544_v50  ;;  %v698_v51 = vsub.f32 %v648_v33, %v2536_v44  ;;  %v660_v2 = vrot.slane %v606_v60, %v2528_v40 }
 0x166   : > { %v652_v54 = vrot.slane %v604_v42, %v2528_v40  ;;  %v713_v55 = vand.u32 2147483647, %v697_v49  ;;  %v656_v57 = vrot.slane %v604_v42, %v2531_v41  ;;  %v608_v61 = vcombine.high %v604_v42, %v604_v42 }
 0x167   : > { %v740_v36 = vadd.f32 %v724_v26, %v723_v25  ;;  %v714_v56 = vand.u32 2147483647, %v698_v51  ;;  %v664_v3 = vrot.slane %v606_v60, %v2531_v41  ;;  %v701_v15 = vsub.f32 %v660_v2, %v2534_v43 }
 0x168   : > { %v699_v59 = vsub.f32 %v652_v54, %v2534_v43  ;;  %v729_v62 = vmul.f32 %v713_v55, %v2541_v48  ;;  %v700_v0 = vsub.f32 %v656_v57, %v2536_v44  ;;  %v668_v6 = vrot.slane %v608_v61, %v2528_v40 }
 0x169   : > { %741 = vadd.xlane.f32.xlu1 %v740_v36  ;;  %v730_v63 = vmul.f32 %v714_v56, %v2544_v50  ;;  %v672_v11 = vrot.slane %v608_v61, %v2531_v41  ;;  %v702_v17 = vsub.f32 %v664_v3, %v2536_v44  ;;  %v717_v24 = vand.u32 2147483647, %v701_v15 }
 0x16a   : > { %v715_v1 = vand.u32 2147483647, %v699_v59  ;;  %v716_v9 = vand.u32 2147483647, %v700_v0  ;;  %v703_v4 = vsub.f32 %v668_v6, %v2534_v43  ;;  %v877_v59 = vld [vmem:[#allocation3] sm:$0xff] }
 0x16b   : > { %v749_v7 = vadd.f32 %v730_v63, %v729_v62  ;;  %v704_v23 = vsub.f32 %v672_v11, %v2536_v44  ;;  %v718_v25 = vand.u32 2147483647, %v702_v17  ;;  %v733_v41 = vmul.f32 %v717_v24, %v2541_v48 }
 0x16c   : > { %v731_v13 = vmul.f32 %v715_v1, %v2541_v48  ;;  %v732_v22 = vmul.f32 %v716_v9, %v2544_v50  ;;  %v719_v26 = vand.u32 2147483647, %v703_v4  ;;  %v1155_v44 = vand.u32 2147483647, %v2487_v21 }
 0x16d   : > { %v720_v28 = vand.u32 2147483647, %v704_v23  ;;  %v734_v30 = vmul.f32 %v718_v25, %v2544_v50  ;;  %v826_v63 = vand.u32 127, %v564_v29 }
 0x16e   : > { %v2515_v35 = vpop.eup %1755  ;;  %v752_v27 = vadd.f32 %v732_v22, %v731_v13  ;;  %v1156_v36 = vsub.f32 0.0, %v1155_v44 }
 0x16f   : > { %889 = vadd.xlane.f32.xlu0 %v2515_v35  ;;  %v1758_v47 = vpop.eup %1757  ;;  %v736_v32 = vmul.f32 %v720_v28, %v2544_v50  ;;  %v755_v43 = vadd.f32 %v734_v30, %v733_v41  ;;  %v829_v2 = vsub.s32 %v826_v63, %v2511_v34 }
 0x170   : > { %v1019_v53 = vadd.f32 1.0, %v1758_v47  ;;  %v726_v47 = vmul.f32 %v710_v31, %v2544_v50  ;;  %v735_v31 = vmul.f32 %v719_v26, %v2541_v48  ;;  %v1157_v38 = vmul.f32 1.442695, %v1156_v36 }
 0x172   : > { %1759 = vrcp.f32 %v1019_v53  ;;  %v728_v53 = vmul.f32 %v712_v39, %v2544_v50  ;;  %v743_v37 = vadd.f32 %v726_v47, %v725_v46  ;;  %v758_v33 = vadd.f32 %v736_v32, %v735_v31  ;;  %v816_v32 = vld [vmem:[#allocation2] sm:$0xff] }
 0x173   : > { %1761 = vpow2.f32 %v1157_v38  ;;  %v1152_v50 = vmax.f32 %v2487_v21, 0.0 }
 0x174   : > { %v746_v58 = vadd.f32 %v728_v53, %v727_v52  ;;  %744 = vadd.xlane.f32.xlu1 %v743_v37 }
 0x177   : > { %v739_v1 = vpop.xlane.xlu1 %738 }
 0x178   : > { %750 = vadd.xlane.f32.xlu1 %v749_v7  ;;  %v830_v9 = vrot.slane %v739_v1, %v829_v2 }
 0x17c   : > { %v2573_v45 = vpop.eup %1759  ;;  %756 = vadd.xlane.f32.xlu1 %v755_v43 }
 0x17d   : > { %1214 = vadd.xlane.f32.xlu0 %v2573_v45  ;;  %v1762_v39 = vpop.eup %1761 }
 0x17e   : > { %v1159_v42 = vadd.f32 1.0, %v1762_v39  ;;  %v1162_v46 = vmul.f32 -0.5, %v1762_v39  ;;  %v1165_v51 = vand.u32 2147483647, %v1762_v39 }
 0x180   : > { %1763 = vlog2.f32 %v1159_v42  ;;  %v1163_v47 = vadd.f32 1.0, %v1162_v46  ;;  %vm1166_vm1 = vcmp.lt.f32.partialorder %v1165_v51, 0.0004427343 }
 0x181   : > { %747 = vadd.xlane.f32.xlu0 %v746_v58 }
 0x182   : > { %v1164_v52 = vmul.f32 %v1762_v39, %v1163_v47 }
 0x185   : > { %753 = vadd.xlane.f32.xlu0 %v752_v27 }
 0x189   : > { %759 = vadd.xlane.f32.xlu0 %v758_v33 }
 0x18a   : > { %v1764_v49 = vpop.eup %1763 }
 0x18b   : > { %v1161_v48 = vmul.f32 0.6931472, %v1764_v49 }
 0x18d   : > { %v1167_v53 = vsel %vm1166_vm1, %v1164_v52, %v1161_v48 }
 0x18e   : > { %v1168_v54 = vadd.f32 %v1167_v53, %v1152_v50 }
 0x190   : > { %v1169_v37 = vsel %vm1153_vm2, %v2487_v21, %v1168_v54 }
 0x191   : > { %1170 = vadd.xlane.f32.xlu1 %v1169_v37 }
 0x1af   : > { %v810_v55 = vpop.f32.mrb[0].mxu0 }
 0x1b0   : > { %v812_v56 = vpop.f32.mrb[1].mxu0  ;;  %v878_v60 = vadd.f32 %v877_v59, %v810_v55 }
 0x1b1   : > { %v813_v57 = vpop.f32.mrb[2].mxu0 }
 0x1b2   : > { %v814_v58 = vpop.f32.mrb[3].mxu0  ;;  %879 = vst.msk [vmem:[#allocation3] sm:$0xff] %vm545_vm3, %v878_v60 }
 0x1b9   : > { %v1227_v53 = vld [vmem:[#allocation3] sm:$0x1] }
 0x1ba   : > { %v1228_v54 = vmax.f32 %v1227_v53, 1e-06 }
 0x1ef   : > { %v1105_v3 = vpop.f32.mrb[4].mxu0 }
 0x1f0   : > { %v1602_v6 = vpop.f32.mrb[5].mxu0 }
 0x1f1   : > { %v1108_v7 = vpop.f32.mrb[6].mxu0 }
 0x1f2   : > { %v1603_v13 = vpop.f32.mrb[7].mxu0 }
 0x1f6   : > { %v742_v11 = vpop.xlane.xlu1 %741 }
 0x1f7   : > { %v834_v29 = vrot.slane %v742_v11, %v829_v2 }
 0x1f9   : > { %v860_v15 = vsel %vm859_vm4, %v834_v29, %v830_v9 }
 0x1fc   : > { %v890_v61 = vpop.xlane.xlu0 %889 }
 0x1fd   : > { %1765 = vrcp.f32 %v890_v61 }
 0x1fe   : > { %1767 = vrcp.f32 %v1228_v54 }
 0x201   : > { %v745_v34 = vpop.xlane.xlu1 %744 }
 0x205   : > { %v751_v24 = vpop.xlane.xlu1 %750 }
 0x206   : > { %v846_v25 = vrot.slane %v751_v24, %v829_v2 }
 0x207   : > { %v1766_v62 = vpop.eup %1765 }
 0x208   : > { %v892_v21 = vmul.f32 %v1766_v62, %v2515_v35  ;;  %v1768_v59 = vpop.eup %1767 }
 0x20a   : > { %v893_v0 = vpack.c.bf16 %v892_v21, %v892_v21  ;;  %v2619_v35 = vpop.xlane.xlu0 %1214 }
 0x20c   : > { %1581 = vmatmul.mubr.bf16.vlgmr.msra.gmra.mrb[0].mxu1 %v893_v0 }
 0x20d   : > { %1605 = vmatpush3.bf16.xpose.msra.mxu1 %v2432_v8  ;;  %1620 = vmatprep.mubr.msk.bf16.mxu1 %vm2057_vm0, %v2056_v5  ;;  %v838_v8 = vrot.slane %v745_v34, %v829_v2 }
 0x20e   : > { %1606 = vmatprep.subr.bf16.mxu1 %v2056_v5  ;;  %v748_v17 = vpop.xlane.xlu0 %747 }
 0x20f   : > { %v842_v4 = vrot.slane %v748_v17, %v829_v2  ;;  %v862_v22 = vsel %vm861_vm5, %v838_v8, %v860_v15 }
 0x211   : > { %v864_v23 = vsel %vm863_vm6, %v842_v4, %v862_v22 }
 0x212   : > { %v866_v26 = vsel %vm865_vm7, %v846_v25, %v864_v23  ;;  %v754_v27 = vpop.xlane.xlu0 %753 }
 0x213   : > { %v850_v28 = vrot.slane %v754_v27, %v829_v2 }
 0x215   : > { %1607 = vmatpush3.bf16.xpose.msra.mxu1 %v2442_v10  ;;  %v868_v41 = vsel %vm867_vm8, %v850_v28, %v866_v26  ;;  %v757_v10 = vpop.xlane.xlu1 %756 }
 0x216   : > { %1608 = vmatprep.subr.bf16.mxu1 %v2056_v5  ;;  %v854_v30 = vrot.slane %v757_v10, %v829_v2  ;;  %v760_v31 = vpop.xlane.xlu0 %759 }
 0x217   : > { %v858_v43 = vrot.slane %v760_v31, %v829_v2  ;;  %v1235_v2 = vrot.slane %v1768_v59, %v2528_v40 }
 0x218   : > { %v870_v33 = vsel %vm869_vm9, %v854_v30, %v868_v41 }
 0x219   : > { %v872_v44 = vsel %vm871_vm10, %v858_v43, %v870_v33 }
 0x21a   : > { %v874_v36 = vadd.f32 %v872_v44, %v816_v32 }
 0x21c   : > { %876 = vst.msk [vmem:[#allocation2] sm:$0xff] %vm545_vm3, %v874_v36 }
 0x21d   : > { %1609 = vmatpush3.bf16.xpose.msra.mxu1 %v2449_v12  ;;  %v1111_v12 = vpack.c.bf16 %v2573_v45, %v2573_v45 }
 0x21e   : > { %1610 = vmatprep.subr.bf16.mxu1 %v2056_v5  ;;  %v1171_v42 = vpop.xlane.xlu1 %1170 }
 0x21f   : > { %v1172_v46 = vsub.f32 %v1171_v42, %v1105_v3 }
 0x221   : > { %v1173_v47 = vmul.f32 0.0078125, %v1172_v46 }
 0x223   : > { %v1230_v21 = vld [vmem:[#allocation2] sm:$0xff] }
 0x224   : > { %v1231_v1 = vadd.f32 1.0, %v1230_v21 }
 0x225   : > { %1611 = vmatpush3.bf16.xpose.msra.mxu1 %v2456_v14 }
 0x226   : > { %1612 = vmatprep.subr.bf16.mxu1 %v2056_v5  ;;  %v1236_v6 = vmul.f32 %v1235_v2, %v1231_v1 }
 0x22d   : > { %1613 = vmatpush3.bf16.xpose.msra.mxu1 %v2463_v16 }
 0x22e   : > { %1614 = vmatprep.subr.bf16.mxu1 %v2056_v5 }
 0x22f   : > { %v1208_v14 = vpop.f32.mrb[8].mxu0 }
 0x230   : > { %v1642_v38 = vpop.f32.mrb[9].mxu0 }
 0x231   : > { %v1211_v39 = vpop.f32.mrb[10].mxu0 }
 0x232   : > { %v1643_v16 = vpop.f32.mrb[11].mxu0 }
 0x235   : > { %1615 = vmatpush3.bf16.xpose.msra.mxu1 %v2470_v18 }
 0x236   : > { %1616 = vmatprep.subr.bf16.mxu1 %v2056_v5 }
 0x23d   : > { %1617 = vmatpush3.bf16.xpose.msra.mxu1 %v2476_v19  ;;  %v1237_v19 = vmul.f32 5.0, %v1173_v47 }
 0x23e   : > { %1618 = vmatprep.subr.bf16.mxu1 %v2056_v5 }
 0x245   : > { %1619 = vmatpush3.bf16.xpose.msra.mxu1 %v2481_v20  ;;  %v1219_v20 = vrot.slane %v1208_v14, %v2528_v40 }
 0x247   : > { %v1220_v45 = vadd.f32 %v1219_v20, %v2619_v35 }
 0x249   : > { %v1221_v37 = vadd.f32 1.0, %v1220_v45 }
 0x24b   : > { %1769 = vrcp.f32 %v1221_v37 }
 0x24c   : > { %1621 = vmatmul.mubr.bf16.vlgmr.msra.gmra.mrb[4].mxu1 %v1111_v12 }
 0x255   : > { %v1770_v62 = vpop.eup %1769 }
 0x2df   : > { %v992_v18 = vpop.f32.mrb[0].mxu1 }
 0x2e0   : > { %v998_v49 = vsub.f32 0.0, %v992_v18  ;;  %v1582_v51 = vpop.f32.mrb[1].mxu1 }
 0x2e1   : > { %v995_v48 = vpop.f32.mrb[2].mxu1 }
 0x2e2   : > { %v1238_v52 = vmul.f32 2.0, %v998_v49  ;;  %v1583_v5 = vpop.f32.mrb[3].mxu1 }
 0x2e4   : > { %v1239_v50 = vadd.f32 %v1238_v52, %v1237_v19 }
 0x31f   : > { %v1146_v55 = vpop.f32.mrb[4].mxu1 }
 0x320   : > { %v1222_v56 = vmul.f32 2.0, %v1146_v55  ;;  %v1622_v57 = vpop.f32.mrb[5].mxu1 }
 0x321   : > { %v1149_v58 = vpop.f32.mrb[6].mxu1 }
 0x322   : > { %v1223_v60 = vadd.f32 1.0, %v1222_v56  ;;  %v1623_v61 = vpop.f32.mrb[7].mxu1 }
 0x324   : > { %v1225_v63 = vmul.f32 %v1770_v62, %v1223_v60 }
 0x326   : > { %v1226_v0 = vsub.f32 1.0, %v1225_v63 }
 0x328   : > { %v1240_v3 = vmul.f32 5.0, %v1226_v0 }
 0x32a   : > { %v1241_v7 = vadd.f32 %v1240_v3, %v1239_v50 }
 0x32c   : > { %v1243_v9 = vadd.f32 %v1241_v7, %v1236_v6  ;;  %1242 = vst [vmem:[%s526_s28] sm:$0xff] %v1241_v7 }
 0x32e   : > { %1244 = vst.msk [vmem:[%s526_s28] sm:$0xff] %vm545_vm3, %v1243_v9 }
 0x32f   : > { %1964 = shalt.err (!%p1961_p9)
}
 0x330   : > { %s1965_s15 = scalar_lea.hbm %s2645_s20, 128  ;;  %s1969_s29 = scalar_lea.hbm %s2702_s7, 256 }
 0x331   : > { %p1966_p12 = scmp.ne.s32.totalorder %s2645_s20, %s1965_s15  ;;  %p1970_p13 = scmp.lt.u32.totalorder %s2645_s20, %s2702_s7 }
 0x332   : > { %p1971_p2 = scmp.lt.u32.totalorder %s1969_s29, %s1965_s15  ;;  %p1973_p3 = scmp.lt.u32.totalorder %s1965_s15, %s2645_s20 }
 0x333   : > { %p1967_p7 = pnand %p1966_p12, %p2748_p0 }
 0x334   : > { %p1972_p10 = por %p1971_p2, %p1970_p13 }
 0x335   : > { %p1968_p11 = pneg %p1967_p7 }
 0x336   : > { %p1974_p1 = por %p1973_p3, %p1972_p10 }
 0x338   : > { %p1975_p8 = pnand %p1974_p1, %p1968_p11 }
 0x33a   : > { %1978 = shalt.err (!%p1975_p8)
}
 0x33b   : > { %1656 = dma.vmem_to_hbm [thread:$0]  (%p2748_p0), %s2647_s23, 128, %s2645_s20, %s1246_s18  }
 0x33c PF: > { %s2749_s12 = sld [smem:[#allocation21_spill]]  ;;  %s2750_s13 = sld [smem:[#allocation27_spill]] }
 0x33d   : > { %s2751_s8 = sld [smem:[#allocation24_spill]] }
 0x342   : > { %s1271_s26 = sand.u32 1, %s2749_s12   ;;  %p2752_p5 = scmp.ne.s32.totalorder %s2750_s13, 0 }
 0x343   : > { %p2753_p6 = scmp.ge.s32.totalorder %s2751_s8, 2  ;;  %s1272_s10 = scalar_lea.sflag [#allocation6], %s1271_s26 }
 0x345   : > { %p1678_p4 = pnand %p2753_p6, %p2752_p5 }
 0x347   : > { %2020 = dma.done.wait (!%p1678_p4), %s1272_s10, 128  }
 0x348   : > { %2022 = vsyncadd (!%p1678_p4), %s1272_s10, 4294967168  ;;  %s32_s29 = sadd.s32 1, %s2751_s8   ;;  %s2754_s17 = sld [smem:[#allocation22_spill]] }
 0x349   : > { %p29_p9 = scmp.ge.s32.totalorder %s32_s29, 4   ;;  %s2755_s26 = sld [smem:[#allocation26_spill]] }
 0x34a   : > { %s2756_s27 = sld [smem:[#allocation23_spill]]  ;;  %s2757_s28 = sld [smem:[#allocation25_spill]] }
 0x34b   : > { %s2758_s24 = smov %s2029_s25  ;;  %31 = sbr.rel (!%p29_p9) target bundleno = 15 (0xf), region = 165 }
 0x34e   : > { %s2759_s25 = smov %s2754_s17 }
 0x352   :  { %1277 = vsyncpa [#allocation5], 1 }
 0x353   :  { %1279 = vsyncpa [#allocation5 + $0x1], 1 }
 0x354   :  { %1280 = vsyncpa [#allocation8], 1 }
 0x355   :  { %1282 = vsyncpa [#allocation8 + $0x1], 1 }
 0x356   :  { %1283 = vsyncpa [#allocation11], 1 }
 0x357   :  { %1285 = vsyncpa [#allocation11 + $0x1], 1 }
 0x358   :  { %1286 = vsyncpa [#allocation14], 1 }
 0x359   :  { %1288 = vsyncpa [#allocation14 + $0x1], 1 }
 0x35a   :  { %1289 = vsyncpa [#allocation6], 1 }
 0x35b   :  { %1291 = vsyncpa [#allocation6 + $0x1], 1 }

</bundles_post_ra>
